<compile_context>
chip_gen: v6e
topology: v6e:2x2x1
jax: 0.10.0
libtpu: 0.0.40
codegen_flags: <defaults>
</compile_context>

<pallas_src>
import numpy as np
import jax
import jax.numpy as jnp
from jax import lax
from jax.experimental import pallas as pl
from jax.experimental.pallas import tpu as pltpu

# ----------------------------- config (small) -----------------------------
BATCH = 2          # B
SEQ_LEN = 4        # cfg.seq_len
SHOT_NUM = 4       # cfg.shot_num
SIM_CHANNEL = 8    # cfg.model.sim_channel
FEAT_DIM = 128     # cfg.model.place_feat_dim
HIDDEN = 32        # cfg.model.lstm_hidden_size
INPUT_DIM = FEAT_DIM + SIM_CHANNEL
EPS = 1e-8         # F.cosine_similarity eps
LANES = 128


def _align8(n):
    return (n + 7) // 8 * 8


# ------------------------ packed-slab static layout ------------------------
_CB = SIM_CHANNEL * BATCH * SEQ_LEN            # C * B * T = 64
LAY = {}
LAY["m"] = 0                                   # BNet matrix  [3*CB, 128]
LAY["whh"] = _align8(3 * _CB)                  # 192: Wstack  [2H, 4H]
LAY["w1"] = _align8(LAY["whh"] + 2 * HIDDEN)   # 256: fc1     [2H, 128]
LAY["b1"] = _align8(LAY["w1"] + 2 * HIDDEN)    # 320: fc1 b   [1, 128]
LAY["w2"] = _align8(LAY["b1"] + 1)             # 328: fc2     [128, 128]
LAY["b2"] = _align8(LAY["w2"] + LANES)         # 456: fc2 b   [1, 128]
LAY["rows128"] = _align8(LAY["b2"] + 1)        # 464
LAY["wctx"] = 0                                # [D, 8H]
LAY["wsim"] = FEAT_DIM                         # 128: [C, 8H]
LAY["bin"] = _align8(FEAT_DIM + SIM_CHANNEL)   # 136: [1, 8H]
LAY["rows256"] = _align8(LAY["bin"] + 1)       # 144


def _full_spec(shape):
    nd = len(shape)
    return pl.BlockSpec(shape, lambda i, _nd=nd: (0,) * _nd)


# ========================= fused forward kernel ===========================
def make_kernel(B, T, C, H, D, lay):
    BS = B * T
    CB = C * BS

    def sigmoid(v):                      # overflow-safe, one EUP tanh pass
        return 0.5 * (jnp.tanh(0.5 * v) + 1.0)

    def kernel(x_ref, w128_ref, w256_ref, out_ref):
        # ---- BNet: ctx conv + both cosine halves + ALL biases: ONE matmul --
        # x_ref is [128,128]: rows 0..BS*S-1 = features, row BS*S = ones
        # (bias column of M), remaining rows zero (free extra K on the MXU).
        P = jnp.dot(w128_ref[lay["m"]:lay["m"] + 3 * CB, :], x_ref[...],
                    preferred_element_type=jnp.float32)            # [3CB, D]

        ctx = jnp.max(P[0:CB].reshape(C, BS, D), axis=0)            # [BS, D]
        p1 = P[CB:2 * CB].reshape(BS, C, D)
        p2 = P[2 * CB:3 * CB].reshape(BS, C, D)
        # one cross-lane reduce pass for dot / |p1|^2 / |p2|^2, then one rsqrt
        red = jnp.sum(jnp.concatenate([p1 * p2, p1 * p1, p2 * p2], axis=1),
                      axis=-1)                                      # [BS, 3C]
        den_sq = jnp.maximum(red[:, C:2 * C] * red[:, 2 * C:3 * C], EPS * EPS)
        sim = red[:, 0:C] * lax.rsqrt(den_sq)                       # [BS, C]

        # ---- hoisted LSTM input projection, both directions at once -------
        gin = (jnp.dot(ctx, w256_ref[lay["wctx"]:lay["wctx"] + D, :],
                       preferred_element_type=jnp.float32)
               + jnp.dot(sim, w256_ref[lay["wsim"]:lay["wsim"] + C, :],
                         preferred_element_type=jnp.float32)
               + w256_ref[lay["bin"]:lay["bin"] + 1, :])            # [BS, 8H]

        wstack = w128_ref[lay["whh"]:lay["whh"] + 2 * H, :]         # [2H, 4H]

        # row masks to keep the stacked state block-diagonal: rows<B=fwd
        mf = jnp.concatenate([jnp.ones((B, 1), jnp.float32),
                              jnp.zeros((B, 1), jnp.float32)], axis=0)
        mb = 1.0 - mf

        # ---- stacked bi-directional recurrence: ONE dot / ONE sigmoid /
        # ONE tanh(g) / ONE tanh(c) per timestep on [2B, 4H] tiles ----------
        H2 = jnp.zeros((2 * B, 2 * H), jnp.float32)                 # [[hf,0],[0,hb]]
        c = jnp.zeros((2 * B, H), jnp.float32)
        hf_out = [None] * T
        hb_out = [None] * T
        for s in range(T):
            tb = T - 1 - s
            g_pre = jnp.concatenate(
                [gin[s * B:(s + 1) * B, 0:4 * H],
                 gin[tb * B:(tb + 1) * B, 4 * H:8 * H]], axis=0)    # [2B, 4H]
            g = g_pre + jnp.dot(H2, wstack, preferred_element_type=jnp.float32)
            sg = sigmoid(g)
            tg = jnp.tanh(g)
            i = sg[:, 0:H]
            f = sg[:, H:2 * H]
            o = sg[:, 3 * H:4 * H]
            gg = tg[:, 2 * H:3 * H]
            c = f * c + i * gg
            h = o * jnp.tanh(c)                                     # [2B, H]
            H2 = jnp.concatenate([h * mf, h * mb], axis=1)          # [2B, 2H]
            hf_out[s] = h[:B]
            hb_out[tb] = h[B:]

        HFB = jnp.concatenate(
            [jnp.concatenate(hf_out, axis=0),
             jnp.concatenate(hb_out, axis=0)], axis=1)              # [BS, 2H]

        # ---- FC head (single dot per layer; lane-padded -> unmasked store) -
        h1 = (jnp.dot(HFB, w128_ref[lay["w1"]:lay["w1"] + 2 * H, :],
                      preferred_element_type=jnp.float32)
              + w128_ref[lay["b1"]:lay["b1"] + 1, :])
        h1 = jnp.maximum(h1, 0.0)
        out_ref[...] = (jnp.dot(h1, w128_ref[lay["w2"]:lay["w2"] + LANES, :],
                                preferred_element_type=jnp.float32)
                        + w128_ref[lay["b2"]:lay["b2"] + 1, :])

    return kernel


# ====================== one-time parameter packing =========================
def prepare_params(p, B=BATCH, T=SEQ_LEN, S=SHOT_NUM, D=FEAT_DIM):
    """Pack all params into 2 contiguous slabs. Call ONCE; outputs are static."""
    C = int(p["w_bnet1"].shape[0])
    H = int(p["whf"].shape[0])
    BS = B * T
    Sh = S // 2
    NH = int(p["w_fc1"].shape[1])    # 100
    NO = int(p["w_fc2"].shape[1])    # 2
    K = BS * S                       # 32 (bias column lives at index K)

    # onehot[r, b, t] = 1  iff  r == t*B + b   (kernel-internal (t,b) order)
    onehot = np.zeros((BS, B, T), np.float32)
    for b in range(B):
        for t in range(T):
            onehot[t * B + b, b, t] = 1.0

    w1 = np.asarray(p["w_bnet1"], np.float32)                    # [C, S]
    wc = np.asarray(p["w_cos"], np.float32)                      # [C, S//2]
    wc1 = np.pad(wc, ((0, 0), (0, S - Sh)))                      # first half
    wc2 = np.pad(wc, ((0, 0), (Sh, 0)))                          # second half
    M0 = np.einsum("cs,rbt->crbts", w1, onehot).reshape(C * BS, K)   # row c*BS+r
    M1 = np.einsum("cs,rbt->rcbts", wc1, onehot).reshape(C * BS, K)  # row r*C+c
    M2 = np.einsum("cs,rbt->rcbts", wc2, onehot).reshape(C * BS, K)
    Mmat = np.concatenate([M0, M1, M2], axis=0)                  # [3CB, K]

    bias0 = np.repeat(np.asarray(p["b_bnet1"], np.float32).reshape(-1), BS)
    bias12 = np.tile(np.asarray(p["b_cos"], np.float32).reshape(-1), BS)
    bcol = np.concatenate([bias0, bias12, bias12])               # [3CB]

    M_pad = np.zeros((3 * C * BS, LANES), np.float32)
    M_pad[:, :K] = Mmat
    M_pad[:, K] = bcol                                           # bias column

    wstack = np.concatenate([np.asarray(p["whf"], np.float32),
                             np.asarray(p["whb"], np.float32)], axis=0)  # [2H,4H]

    w1p = np.zeros((2 * H, LANES), np.float32)
    w1p[:, :NH] = np.asarray(p["w_fc1"], np.float32)
    b1p = np.zeros((1, LANES), np.float32)
    b1p[:, :NH] = np.asarray(p["b_fc1"], np.float32)
    w2p = np.zeros((LANES, LANES), np.float32)
    w2p[:NH, :NO] = np.asarray(p["w_fc2"], np.float32)
    b2p = np.zeros((1, LANES), np.float32)
    b2p[:, :NO] = np.asarray(p["b_fc2"], np.float32)

    slab128 = np.zeros((LAY["rows128"], LANES), np.float32)
    slab128[LAY["m"]:LAY["m"] + 3 * C * BS] = M_pad
    slab128[LAY["whh"]:LAY["whh"] + 2 * H] = wstack
    slab128[LAY["w1"]:LAY["w1"] + 2 * H] = w1p
    slab128[LAY["b1"]:LAY["b1"] + 1] = b1p
    slab128[LAY["w2"]:LAY["w2"] + LANES] = w2p
    slab128[LAY["b2"]:LAY["b2"] + 1] = b2p

    w_ctx = np.concatenate([np.asarray(p["wif"], np.float32)[:D],
                            np.asarray(p["wib"], np.float32)[:D]], axis=1)   # [D, 8H]
    w_sim = np.concatenate([np.asarray(p["wif"], np.float32)[D:],
                            np.asarray(p["wib"], np.float32)[D:]], axis=1)   # [C, 8H]
    b_in = np.concatenate([np.asarray(p["bf"], np.float32),
                           np.asarray(p["bb"], np.float32)], axis=1)         # [1, 8H]

    slab256 = np.zeros((LAY["rows256"], 8 * H), np.float32)
    slab256[LAY["wctx"]:LAY["wctx"] + D] = w_ctx
    slab256[LAY["wsim"]:LAY["wsim"] + C] = w_sim
    slab256[LAY["bin"]:LAY["bin"] + 1] = b_in

    return jnp.asarray(slab128), jnp.asarray(slab256)


# ============================ per-call wrapper ==============================
def lgss_one_forward(x, slab128, slab256):
    B, T, S, D = x.shape
    BS = B * T
    NO = 2

    # lane-dense input + ones row (folds all BNet biases into the matmul) +
    # zero rows so the contraction K is a full 128 lanes (free on the MXU).
    x2 = x.reshape(BS * S, D)
    xin = jnp.concatenate(
        [x2,
         jnp.ones((1, D), x2.dtype),
         jnp.zeros((LANES - BS * S - 1, D), x2.dtype)], axis=0)   # [128, 128]

    out_pad = pl.pallas_call(
        make_kernel(B=B, T=T, C=SIM_CHANNEL, H=HIDDEN, D=D, lay=LAY),
        out_shape=jax.ShapeDtypeStruct((BS, LANES), jnp.float32),
        grid=(1,),
        in_specs=[_full_spec(xin.shape),
                  _full_spec(tuple(slab128.shape)),
                  _full_spec(tuple(slab256.shape))],
        out_specs=_full_spec((BS, LANES)),
        compiler_params=pltpu.CompilerParams(dimension_semantics=("arbitrary",)),
    )(xin, slab128, slab256)

    # kernel rows are (t, b)-ordered; restore PyTorch's (b, t) row order.
    logits = out_pad[:, :NO].reshape(T, B, NO).transpose(1, 0, 2).reshape(B * T, NO)
    return logits


# ============================ reference (plain JAX) ========================
def reference_forward(x, p):
    B, T, S, D = x.shape
    C = p["w_bnet1"].shape[0]
    H = p["whf"].shape[0]
    xf = x.reshape(B * T, S, D)
    ctx_full = jnp.einsum("cs,bsd->bcd", p["w_bnet1"], xf) + p["b_bnet1"].reshape(1, C, 1)
    ctx = jnp.max(ctx_full, axis=1)
    Sh = S // 2
    p1 = jnp.einsum("cs,bsd->bcd", p["w_cos"], xf[:, :Sh]) + p["b_cos"].reshape(1, C, 1)
    p2 = jnp.einsum("cs,bsd->bcd", p["w_cos"], xf[:, Sh:]) + p["b_cos"].reshape(1, C, 1)
    dot = jnp.sum(p1 * p2, -1)
    n1 = jnp.sqrt(jnp.sum(p1 * p1, -1))
    n2 = jnp.sqrt(jnp.sum(p2 * p2, -1))
    sim = dot / (jnp.maximum(n1, EPS) * jnp.maximum(n2, EPS))
    seq = jnp.concatenate([ctx, sim], axis=1).reshape(B, T, -1)

    def run_dir(wih, whh, b, reverse):
        h = jnp.zeros((B, H)); c = jnp.zeros((B, H))
        outs = [None] * T
        order = range(T - 1, -1, -1) if reverse else range(T)
        for t in order:
            g = seq[:, t] @ wih + h @ whh + b
            i = jax.nn.sigmoid(g[:, :H]); f = jax.nn.sigmoid(g[:, H:2 * H])
            gg = jnp.tanh(g[:, 2 * H:3 * H]); o = jax.nn.sigmoid(g[:, 3 * H:])
            c = f * c + i * gg
            h = o * jnp.tanh(c)
            outs[t] = h
        return jnp.stack(outs, axis=1)

    of = run_dir(p["wif"], p["whf"], p["bf"][0], False)
    ob = run_dir(p["wib"], p["whb"], p["bb"][0], True)
    out = jnp.concatenate([of, ob], -1).reshape(B * T, 2 * H)
    h1 = jnp.maximum(out @ p["w_fc1"] + p["b_fc1"][0], 0.0)
    return h1 @ p["w_fc2"] + p["b_fc2"][0]


# ================================== main ===================================
if __name__ == "__main__":
    key = jax.random.PRNGKey(0)
    ks = jax.random.split(key, 20)

    def u(k, shape, fan_in):
        bound = 1.0 / np.sqrt(fan_in)
        return jax.random.uniform(k, shape, jnp.float32, -bound, bound)

    H = HIDDEN
    params = {
        # BNet.conv1: Conv2d(1, C, (shot,1)) -> weight (C, shot), bias (1, C)
        "w_bnet1": u(ks[1], (SIM_CHANNEL, SHOT_NUM), SHOT_NUM),
        "b_bnet1": u(ks[2], (1, SIM_CHANNEL), SHOT_NUM),
        # Cos.conv1: Conv2d(1, C, (shot//2,1))
        "w_cos": u(ks[3], (SIM_CHANNEL, SHOT_NUM // 2), SHOT_NUM // 2),
        "b_cos": u(ks[4], (1, SIM_CHANNEL), SHOT_NUM // 2),
        # bidirectional LSTM (gate order i,f,g,o; bias = b_ih + b_hh combined)
        "wif": u(ks[5], (INPUT_DIM, 4 * H), H),
        "whf": u(ks[6], (H, 4 * H), H),
        "bf":  u(ks[7], (1, 4 * H), H),
        "wib": u(ks[8], (INPUT_DIM, 4 * H), H),
        "whb": u(ks[9], (H, 4 * H), H),
        "bb":  u(ks[10], (1, 4 * H), H),
        # fc1: Linear(2H, 100), fc2: Linear(100, 2)
        "w_fc1": u(ks[11], (2 * H, 100), 2 * H),
        "b_fc1": u(ks[12], (1, 100), 2 * H),
        "w_fc2": u(ks[13], (100, 2), 100),
        "b_fc2": u(ks[14], (1, 2), 100),
    }

    x = jax.random.normal(ks[0], (BATCH, SEQ_LEN, SHOT_NUM, FEAT_DIM), jnp.float32)

    # one-time parameter packing (hoisted out of the per-call jit path)
    slab128, slab256 = prepare_params(params)

    fwd = jax.jit(lgss_one_forward)
    out = jax.block_until_ready(fwd(x, slab128, slab256))
    assert out.shape == (BATCH * SEQ_LEN, 2), out.shape

    ref = jax.block_until_ready(reference_forward(x, params))
    # Tolerance leaves headroom for MXU f32-matmul precision differences and
    # the rsqrt-based cosine denominator (eps clamp on n1^2*n2^2 vs n1,n2).
    np.testing.assert_allclose(np.asarray(out), np.asarray(ref), rtol=5e-3, atol=5e-3)

    print("KERNEL_OK")
</pallas_src>

<mosaic_0001>
module attributes {stable_mosaic.version = 11 : i64} {
  func.func @kernel(%arg0: i32, %arg1: memref<128x128xf32, #tpu.memory_space<vmem>>, %arg2: memref<464x128xf32, #tpu.memory_space<vmem>>, %arg3: memref<144x256xf32, #tpu.memory_space<vmem>>, %arg4: memref<8x128xf32, #tpu.memory_space<vmem>>) attributes {dimension_semantics = [#tpu.dimension_semantics<arbitrary>], iteration_bounds = array<i64: 1>, scalar_prefetch = 0 : i64, scratch_operands = 0 : i64, tpu.core_type = #tpu.core_type<tc>, window_params = [{pipeline_mode = #tpu.pipeline_mode<synchronous>, transform_indices = @transform_0, window_bounds = array<i64: 128, 128>}, {pipeline_mode = #tpu.pipeline_mode<synchronous>, transform_indices = @transform_1, window_bounds = array<i64: 464, 128>}, {pipeline_mode = #tpu.pipeline_mode<synchronous>, transform_indices = @transform_2, window_bounds = array<i64: 144, 256>}, {pipeline_mode = #tpu.pipeline_mode<synchronous>, transform_indices = @transform_3, window_bounds = array<i64: 8, 128>}]} {
    %c0 = arith.constant 0 : index
    %c0_0 = arith.constant 0 : index
    %0 = vector.load %arg2[%c0, %c0_0] : memref<464x128xf32, #tpu.memory_space<vmem>>, vector<192x128xf32>
    %c0_1 = arith.constant 0 : index
    %c0_2 = arith.constant 0 : index
    %1 = vector.load %arg1[%c0_1, %c0_2] : memref<128x128xf32, #tpu.memory_space<vmem>>, vector<128x128xf32>
    %cst = arith.constant dense<0.000000e+00> : vector<192x128xf32>
    %2 = tpu.matmul %0, %1, %cst {dimension_numbers = #tpu.dot_dimension_numbers<[1], [0], [0], [1], [0, 0, 1, 1], [], []>} : vector<192x128xf32>, vector<128x128xf32>, vector<192x128xf32> -> vector<192x128xf32>
    %3 = vector.extract_strided_slice %2 {offsets = [0, 0], sizes = [64, 128], strides = [1, 1]} : vector<192x128xf32> to vector<64x128xf32>
    %4 = vector.shape_cast %3 : vector<64x128xf32> to vector<8x8x128xf32>
    %cst_3 = arith.constant dense<0xFF800000> : vector<8x128xf32>
    %5 = vector.multi_reduction <maximumf>, %4, %cst_3 [0] : vector<8x8x128xf32> to vector<8x128xf32>
    %6 = vector.extract_strided_slice %2 {offsets = [64, 0], sizes = [64, 128], strides = [1, 1]} : vector<192x128xf32> to vector<64x128xf32>
    %7 = vector.shape_cast %6 : vector<64x128xf32> to vector<8x8x128xf32>
    %8 = vector.extract_strided_slice %2 {offsets = [128, 0], sizes = [64, 128], strides = [1, 1]} : vector<192x128xf32> to vector<64x128xf32>
    %9 = vector.shape_cast %8 : vector<64x128xf32> to vector<8x8x128xf32>
    %10 = arith.mulf %7, %9 : vector<8x8x128xf32>
    %11 = arith.mulf %7, %7 : vector<8x8x128xf32>
    %12 = arith.mulf %9, %9 : vector<8x8x128xf32>
    %13 = tpu.concatenate %10, %11, %12 in 1 : vector<8x8x128xf32>, vector<8x8x128xf32>, vector<8x8x128xf32> -> vector<8x24x128xf32>
    %cst_4 = arith.constant dense<0.000000e+00> : vector<8x24xf32>
    %14 = vector.multi_reduction <add>, %13, %cst_4 [2] : vector<8x24x128xf32> to vector<8x24xf32>
    %15 = vector.extract_strided_slice %14 {offsets = [0, 8], sizes = [8, 8], strides = [1, 1]} : vector<8x24xf32> to vector<8x8xf32>
    %16 = vector.extract_strided_slice %14 {offsets = [0, 16], sizes = [8, 8], strides = [1, 1]} : vector<8x24xf32> to vector<8x8xf32>
    %17 = arith.mulf %15, %16 : vector<8x8xf32>
    %cst_5 = arith.constant 1.000000e-16 : f32
    %18 = vector.broadcast %cst_5 : f32 to vector<8x8xf32>
    %19 = arith.maximumf %17, %18 : vector<8x8xf32>
    %20 = vector.extract_strided_slice %14 {offsets = [0, 0], sizes = [8, 8], strides = [1, 1]} : vector<8x24xf32> to vector<8x8xf32>
    %21 = math.rsqrt %19 : vector<8x8xf32>
    %22 = arith.mulf %20, %21 : vector<8x8xf32>
    %c0_6 = arith.constant 0 : index
    %c0_7 = arith.constant 0 : index
    %23 = vector.load %arg3[%c0_6, %c0_7] : memref<144x256xf32, #tpu.memory_space<vmem>>, vector<128x256xf32>
    %cst_8 = arith.constant dense<0.000000e+00> : vector<8x256xf32>
    %24 = tpu.matmul %5, %23, %cst_8 {dimension_numbers = #tpu.dot_dimension_numbers<[1], [0], [0], [1], [0, 0, 1, 1], [], []>} : vector<8x128xf32>, vector<128x256xf32>, vector<8x256xf32> -> vector<8x256xf32>
    %c128 = arith.constant 128 : index
    %c0_9 = arith.constant 0 : index
    %25 = vector.load %arg3[%c128, %c0_9] : memref<144x256xf32, #tpu.memory_space<vmem>>, vector<8x256xf32>
    %cst_10 = arith.constant dense<0.000000e+00> : vector<8x256xf32>
    %26 = tpu.matmul %22, %25, %cst_10 {dimension_numbers = #tpu.dot_dimension_numbers<[1], [0], [0], [1], [0, 0, 1, 1], [], []>} : vector<8x8xf32>, vector<8x256xf32>, vector<8x256xf32> -> vector<8x256xf32>
    %27 = arith.addf %24, %26 : vector<8x256xf32>
    %c136 = arith.constant 136 : index
    %c0_11 = arith.constant 0 : index
    %28 = vector.load %arg3[%c136, %c0_11] : memref<144x256xf32, #tpu.memory_space<vmem>>, vector<1x256xf32>
    %29 = vector.broadcast %28 : vector<1x256xf32> to vector<8x256xf32>
    %30 = arith.addf %27, %29 : vector<8x256xf32>
    %c192 = arith.constant 192 : index
    %c0_12 = arith.constant 0 : index
    %31 = vector.load %arg2[%c192, %c0_12] : memref<464x128xf32, #tpu.memory_space<vmem>>, vector<64x128xf32>
    %cst_13 = arith.constant 1.000000e+00 : f32
    %32 = vector.broadcast %cst_13 : f32 to vector<2x1xf32>
    %cst_14 = arith.constant 0.000000e+00 : f32
    %33 = vector.broadcast %cst_14 : f32 to vector<2x1xf32>
    %34 = tpu.concatenate %32, %33 in 0 : vector<2x1xf32>, vector<2x1xf32> -> vector<4x1xf32>
    %cst_15 = arith.constant 1.000000e+00 : f32
    %35 = vector.broadcast %cst_15 : f32 to vector<4x1xf32>
    %36 = arith.subf %35, %34 : vector<4x1xf32>
    %cst_16 = arith.constant 0.000000e+00 : f32
    %37 = vector.broadcast %cst_16 : f32 to vector<4x64xf32>
    %cst_17 = arith.constant 0.000000e+00 : f32
    %38 = vector.broadcast %cst_17 : f32 to vector<4x32xf32>
    %39 = vector.extract_strided_slice %30 {offsets = [0, 0], sizes = [2, 128], strides = [1, 1]} : vector<8x256xf32> to vector<2x128xf32>
    %40 = vector.extract_strided_slice %30 {offsets = [6, 128], sizes = [2, 128], strides = [1, 1]} : vector<8x256xf32> to vector<2x128xf32>
    %41 = tpu.concatenate %39, %40 in 0 : vector<2x128xf32>, vector<2x128xf32> -> vector<4x128xf32>
    %cst_18 = arith.constant dense<0.000000e+00> : vector<4x128xf32>
    %42 = tpu.matmul %37, %31, %cst_18 {dimension_numbers = #tpu.dot_dimension_numbers<[1], [0], [0], [1], [0, 0, 1, 1], [], []>} : vector<4x64xf32>, vector<64x128xf32>, vector<4x128xf32> -> vector<4x128xf32>
    %43 = arith.addf %41, %42 : vector<4x128xf32>
    %cst_19 = arith.constant 5.000000e-01 : f32
    %44 = vector.broadcast %cst_19 : f32 to vector<4x128xf32>
    %45 = arith.mulf %44, %43 : vector<4x128xf32>
    %46 = math.tanh %45 : vector<4x128xf32>
    %cst_20 = arith.constant 1.000000e+00 : f32
    %47 = vector.broadcast %cst_20 : f32 to vector<4x128xf32>
    %48 = arith.addf %46, %47 : vector<4x128xf32>
    %cst_21 = arith.constant 5.000000e-01 : f32
    %49 = vector.broadcast %cst_21 : f32 to vector<4x128xf32>
    %50 = arith.mulf %49, %48 : vector<4x128xf32>
    %51 = math.tanh %43 : vector<4x128xf32>
    %52 = vector.extract_strided_slice %50 {offsets = [0, 0], sizes = [4, 32], strides = [1, 1]} : vector<4x128xf32> to vector<4x32xf32>
    %53 = vector.extract_strided_slice %50 {offsets = [0, 32], sizes = [4, 32], strides = [1, 1]} : vector<4x128xf32> to vector<4x32xf32>
    %54 = vector.extract_strided_slice %50 {offsets = [0, 96], sizes = [4, 32], strides = [1, 1]} : vector<4x128xf32> to vector<4x32xf32>
    %55 = vector.extract_strided_slice %51 {offsets = [0, 64], sizes = [4, 32], strides = [1, 1]} : vector<4x128xf32> to vector<4x32xf32>
    %56 = arith.mulf %53, %38 : vector<4x32xf32>
    %57 = arith.mulf %52, %55 : vector<4x32xf32>
    %58 = arith.addf %56, %57 : vector<4x32xf32>
    %59 = math.tanh %58 : vector<4x32xf32>
    %60 = arith.mulf %54, %59 : vector<4x32xf32>
    %61 = vector.broadcast %34 : vector<4x1xf32> to vector<4x32xf32>
    %62 = arith.mulf %60, %61 : vector<4x32xf32>
    %63 = vector.broadcast %36 : vector<4x1xf32> to vector<4x32xf32>
    %64 = arith.mulf %60, %63 : vector<4x32xf32>
    %65 = tpu.concatenate %62, %64 in 1 : vector<4x32xf32>, vector<4x32xf32> -> vector<4x64xf32>
    %66 = vector.extract_strided_slice %60 {offsets = [0, 0], sizes = [2, 32], strides = [1, 1]} : vector<4x32xf32> to vector<2x32xf32>
    %67 = vector.extract_strided_slice %60 {offsets = [2, 0], sizes = [2, 32], strides = [1, 1]} : vector<4x32xf32> to vector<2x32xf32>
    %68 = vector.extract_strided_slice %30 {offsets = [2, 0], sizes = [2, 128], strides = [1, 1]} : vector<8x256xf32> to vector<2x128xf32>
    %69 = vector.extract_strided_slice %30 {offsets = [4, 128], sizes = [2, 128], strides = [1, 1]} : vector<8x256xf32> to vector<2x128xf32>
    %70 = tpu.concatenate %68, %69 in 0 : vector<2x128xf32>, vector<2x128xf32> -> vector<4x128xf32>
    %cst_22 = arith.constant dense<0.000000e+00> : vector<4x128xf32>
    %71 = tpu.matmul %65, %31, %cst_22 {dimension_numbers = #tpu.dot_dimension_numbers<[1], [0], [0], [1], [0, 0, 1, 1], [], []>} : vector<4x64xf32>, vector<64x128xf32>, vector<4x128xf32> -> vector<4x128xf32>
    %72 = arith.addf %70, %71 : vector<4x128xf32>
    %cst_23 = arith.constant 5.000000e-01 : f32
    %73 = vector.broadcast %cst_23 : f32 to vector<4x128xf32>
    %74 = arith.mulf %73, %72 : vector<4x128xf32>
    %75 = math.tanh %74 : vector<4x128xf32>
    %cst_24 = arith.constant 1.000000e+00 : f32
    %76 = vector.broadcast %cst_24 : f32 to vector<4x128xf32>
    %77 = arith.addf %75, %76 : vector<4x128xf32>
    %cst_25 = arith.constant 5.000000e-01 : f32
    %78 = vector.broadcast %cst_25 : f32 to vector<4x128xf32>
    %79 = arith.mulf %78, %77 : vector<4x128xf32>
    %80 = math.tanh %72 : vector<4x128xf32>
    %81 = vector.extract_strided_slice %79 {offsets = [0, 0], sizes = [4, 32], strides = [1, 1]} : vector<4x128xf32> to vector<4x32xf32>
    %82 = vector.extract_strided_slice %79 {offsets = [0, 32], sizes = [4, 32], strides = [1, 1]} : vector<4x128xf32> to vector<4x32xf32>
    %83 = vector.extract_strided_slice %79 {offsets = [0, 96], sizes = [4, 32], strides = [1, 1]} : vector<4x128xf32> to vector<4x32xf32>
    %84 = vector.extract_strided_slice %80 {offsets = [0, 64], sizes = [4, 32], strides = [1, 1]} : vector<4x128xf32> to vector<4x32xf32>
    %85 = arith.mulf %82, %58 : vector<4x32xf32>
    %86 = arith.mulf %81, %84 : vector<4x32xf32>
    %87 = arith.addf %85, %86 : vector<4x32xf32>
    %88 = math.tanh %87 : vector<4x32xf32>
    %89 = arith.mulf %83, %88 : vector<4x32xf32>
    %90 = vector.broadcast %34 : vector<4x1xf32> to vector<4x32xf32>
    %91 = arith.mulf %89, %90 : vector<4x32xf32>
    %92 = vector.broadcast %36 : vector<4x1xf32> to vector<4x32xf32>
    %93 = arith.mulf %89, %92 : vector<4x32xf32>
    %94 = tpu.concatenate %91, %93 in 1 : vector<4x32xf32>, vector<4x32xf32> -> vector<4x64xf32>
    %95 = vector.extract_strided_slice %89 {offsets = [0, 0], sizes = [2, 32], strides = [1, 1]} : vector<4x32xf32> to vector<2x32xf32>
    %96 = vector.extract_strided_slice %89 {offsets = [2, 0], sizes = [2, 32], strides = [1, 1]} : vector<4x32xf32> to vector<2x32xf32>
    %97 = vector.extract_strided_slice %30 {offsets = [4, 0], sizes = [2, 128], strides = [1, 1]} : vector<8x256xf32> to vector<2x128xf32>
    %98 = vector.extract_strided_slice %30 {offsets = [2, 128], sizes = [2, 128], strides = [1, 1]} : vector<8x256xf32> to vector<2x128xf32>
    %99 = tpu.concatenate %97, %98 in 0 : vector<2x128xf32>, vector<2x128xf32> -> vector<4x128xf32>
    %cst_26 = arith.constant dense<0.000000e+00> : vector<4x128xf32>
    %100 = tpu.matmul %94, %31, %cst_26 {dimension_numbers = #tpu.dot_dimension_numbers<[1], [0], [0], [1], [0, 0, 1, 1], [], []>} : vector<4x64xf32>, vector<64x128xf32>, vector<4x128xf32> -> vector<4x128xf32>
    %101 = arith.addf %99, %100 : vector<4x128xf32>
    %cst_27 = arith.constant 5.000000e-01 : f32
    %102 = vector.broadcast %cst_27 : f32 to vector<4x128xf32>
    %103 = arith.mulf %102, %101 : vector<4x128xf32>
    %104 = math.tanh %103 : vector<4x128xf32>
    %cst_28 = arith.constant 1.000000e+00 : f32
    %105 = vector.broadcast %cst_28 : f32 to vector<4x128xf32>
    %106 = arith.addf %104, %105 : vector<4x128xf32>
    %cst_29 = arith.constant 5.000000e-01 : f32
    %107 = vector.broadcast %cst_29 : f32 to vector<4x128xf32>
    %108 = arith.mulf %107, %106 : vector<4x128xf32>
    %109 = math.tanh %101 : vector<4x128xf32>
    %110 = vector.extract_strided_slice %108 {offsets = [0, 0], sizes = [4, 32], strides = [1, 1]} : vector<4x128xf32> to vector<4x32xf32>
    %111 = vector.extract_strided_slice %108 {offsets = [0, 32], sizes = [4, 32], strides = [1, 1]} : vector<4x128xf32> to vector<4x32xf32>
    %112 = vector.extract_strided_slice %108 {offsets = [0, 96], sizes = [4, 32], strides = [1, 1]} : vector<4x128xf32> to vector<4x32xf32>
    %113 = vector.extract_strided_slice %109 {offsets = [0, 64], sizes = [4, 32], strides = [1, 1]} : vector<4x128xf32> to vector<4x32xf32>
    %114 = arith.mulf %111, %87 : vector<4x32xf32>
    %115 = arith.mulf %110, %113 : vector<4x32xf32>
    %116 = arith.addf %114, %115 : vector<4x32xf32>
    %117 = math.tanh %116 : vector<4x32xf32>
    %118 = arith.mulf %112, %117 : vector<4x32xf32>
    %119 = vector.broadcast %34 : vector<4x1xf32> to vector<4x32xf32>
    %120 = arith.mulf %118, %119 : vector<4x32xf32>
    %121 = vector.broadcast %36 : vector<4x1xf32> to vector<4x32xf32>
    %122 = arith.mulf %118, %121 : vector<4x32xf32>
    %123 = tpu.concatenate %120, %122 in 1 : vector<4x32xf32>, vector<4x32xf32> -> vector<4x64xf32>
    %124 = vector.extract_strided_slice %118 {offsets = [0, 0], sizes = [2, 32], strides = [1, 1]} : vector<4x32xf32> to vector<2x32xf32>
    %125 = vector.extract_strided_slice %118 {offsets = [2, 0], sizes = [2, 32], strides = [1, 1]} : vector<4x32xf32> to vector<2x32xf32>
    %126 = vector.extract_strided_slice %30 {offsets = [6, 0], sizes = [2, 128], strides = [1, 1]} : vector<8x256xf32> to vector<2x128xf32>
    %127 = vector.extract_strided_slice %30 {offsets = [0, 128], sizes = [2, 128], strides = [1, 1]} : vector<8x256xf32> to vector<2x128xf32>
    %128 = tpu.concatenate %126, %127 in 0 : vector<2x128xf32>, vector<2x128xf32> -> vector<4x128xf32>
    %cst_30 = arith.constant dense<0.000000e+00> : vector<4x128xf32>
    %129 = tpu.matmul %123, %31, %cst_30 {dimension_numbers = #tpu.dot_dimension_numbers<[1], [0], [0], [1], [0, 0, 1, 1], [], []>} : vector<4x64xf32>, vector<64x128xf32>, vector<4x128xf32> -> vector<4x128xf32>
    %130 = arith.addf %128, %129 : vector<4x128xf32>
    %cst_31 = arith.constant 5.000000e-01 : f32
    %131 = vector.broadcast %cst_31 : f32 to vector<4x128xf32>
    %132 = arith.mulf %131, %130 : vector<4x128xf32>
    %133 = math.tanh %132 : vector<4x128xf32>
    %cst_32 = arith.constant 1.000000e+00 : f32
    %134 = vector.broadcast %cst_32 : f32 to vector<4x128xf32>
    %135 = arith.addf %133, %134 : vector<4x128xf32>
    %cst_33 = arith.constant 5.000000e-01 : f32
    %136 = vector.broadcast %cst_33 : f32 to vector<4x128xf32>
    %137 = arith.mulf %136, %135 : vector<4x128xf32>
    %138 = math.tanh %130 : vector<4x128xf32>
    %139 = vector.extract_strided_slice %137 {offsets = [0, 0], sizes = [4, 32], strides = [1, 1]} : vector<4x128xf32> to vector<4x32xf32>
    %140 = vector.extract_strided_slice %137 {offsets = [0, 32], sizes = [4, 32], strides = [1, 1]} : vector<4x128xf32> to vector<4x32xf32>
    %141 = vector.extract_strided_slice %137 {offsets = [0, 96], sizes = [4, 32], strides = [1, 1]} : vector<4x128xf32> to vector<4x32xf32>
    %142 = vector.extract_strided_slice %138 {offsets = [0, 64], sizes = [4, 32], strides = [1, 1]} : vector<4x128xf32> to vector<4x32xf32>
    %143 = arith.mulf %140, %116 : vector<4x32xf32>
    %144 = arith.mulf %139, %142 : vector<4x32xf32>
    %145 = arith.addf %143, %144 : vector<4x32xf32>
    %146 = math.tanh %145 : vector<4x32xf32>
    %147 = arith.mulf %141, %146 : vector<4x32xf32>
    %148 = vector.extract_strided_slice %147 {offsets = [0, 0], sizes = [2, 32], strides = [1, 1]} : vector<4x32xf32> to vector<2x32xf32>
    %149 = vector.extract_strided_slice %147 {offsets = [2, 0], sizes = [2, 32], strides = [1, 1]} : vector<4x32xf32> to vector<2x32xf32>
    %150 = tpu.concatenate %66, %95, %124, %148 in 0 : vector<2x32xf32>, vector<2x32xf32>, vector<2x32xf32>, vector<2x32xf32> -> vector<8x32xf32>
    %151 = tpu.concatenate %149, %125, %96, %67 in 0 : vector<2x32xf32>, vector<2x32xf32>, vector<2x32xf32>, vector<2x32xf32> -> vector<8x32xf32>
    %152 = tpu.concatenate %150, %151 in 1 : vector<8x32xf32>, vector<8x32xf32> -> vector<8x64xf32>
    %c256 = arith.constant 256 : index
    %c0_34 = arith.constant 0 : index
    %153 = vector.load %arg2[%c256, %c0_34] : memref<464x128xf32, #tpu.memory_space<vmem>>, vector<64x128xf32>
    %cst_35 = arith.constant dense<0.000000e+00> : vector<8x128xf32>
    %154 = tpu.matmul %152, %153, %cst_35 {dimension_numbers = #tpu.dot_dimension_numbers<[1], [0], [0], [1], [0, 0, 1, 1], [], []>} : vector<8x64xf32>, vector<64x128xf32>, vector<8x128xf32> -> vector<8x128xf32>
    %c320 = arith.constant 320 : index
    %c0_36 = arith.constant 0 : index
    %155 = vector.load %arg2[%c320, %c0_36] : memref<464x128xf32, #tpu.memory_space<vmem>>, vector<1x128xf32>
    %156 = vector.broadcast %155 : vector<1x128xf32> to vector<8x128xf32>
    %157 = arith.addf %154, %156 : vector<8x128xf32>
    %cst_37 = arith.constant 0.000000e+00 : f32
    %158 = vector.broadcast %cst_37 : f32 to vector<8x128xf32>
    %159 = arith.maximumf %157, %158 : vector<8x128xf32>
    %c328 = arith.constant 328 : index
    %c0_38 = arith.constant 0 : index
    %160 = vector.load %arg2[%c328, %c0_38] : memref<464x128xf32, #tpu.memory_space<vmem>>, vector<128x128xf32>
    %cst_39 = arith.constant dense<0.000000e+00> : vector<8x128xf32>
    %161 = tpu.matmul %159, %160, %cst_39 {dimension_numbers = #tpu.dot_dimension_numbers<[1], [0], [0], [1], [0, 0, 1, 1], [], []>} : vector<8x128xf32>, vector<128x128xf32>, vector<8x128xf32> -> vector<8x128xf32>
    %c456 = arith.constant 456 : index
    %c0_40 = arith.constant 0 : index
    %162 = vector.load %arg2[%c456, %c0_40] : memref<464x128xf32, #tpu.memory_space<vmem>>, vector<1x128xf32>
    %163 = vector.broadcast %162 : vector<1x128xf32> to vector<8x128xf32>
    %164 = arith.addf %161, %163 : vector<8x128xf32>
    %c0_41 = arith.constant 0 : index
    %c0_42 = arith.constant 0 : index
    %165 = vector.load %arg4[%c0_41, %c0_42] : memref<8x128xf32, #tpu.memory_space<vmem>>, vector<8x128xf32>
    tpu.vector_store %arg4[%c0_41, %c0_42], %164 {strides = array<i32>} : memref<8x128xf32, #tpu.memory_space<vmem>>, vector<8x128xf32>,
    return
  }
  func.func @transform_0(%arg0: i32) -> (i32, i32) {
    %c0_i32 = arith.constant 0 : i32
    %c0_i32_0 = arith.constant 0 : i32
    %c0_i32_1 = arith.constant 0 : i32
    return %c0_i32, %c0_i32_0 : i32, i32
  }
  func.func @transform_1(%arg0: i32) -> (i32, i32) {
    %c0_i32 = arith.constant 0 : i32
    %c0_i32_0 = arith.constant 0 : i32
    %c0_i32_1 = arith.constant 0 : i32
    return %c0_i32, %c0_i32_0 : i32, i32
  }
  func.func @transform_2(%arg0: i32) -> (i32, i32) {
    %c0_i32 = arith.constant 0 : i32
    %c0_i32_0 = arith.constant 0 : i32
    %c0_i32_1 = arith.constant 0 : i32
    return %c0_i32, %c0_i32_0 : i32, i32
  }
  func.func @transform_3(%arg0: i32) -> (i32, i32) {
    %c0_i32 = arith.constant 0 : i32
    %c0_i32_0 = arith.constant 0 : i32
    %c0_i32_1 = arith.constant 0 : i32
    return %c0_i32, %c0_i32_0 : i32, i32
  }
}

</mosaic_0001>

<bundles_post_ra>
// kernel: lgss_one_forward.1
= control target key start
LH: loop header
LB: loop body
LE: loop exit
PB: predicated region body
PF: predicated region fallthrough
CT: control target
= control target key end

     0   :  { %8 = vsyncpa [#allocation3], 0  ;;  %s1994_s0 = inlined_call_operand.vmem [shape: f32[128,128], index: 0, kind: input, shape index: {}]   ;;  %s1995_s1 = inlined_call_operand.hbm [shape: f32[464,128], index: 1, kind: input, shape index: {}]   ;;  %s1996_s2 = inlined_call_operand.hbm [shape: f32[144,256], index: 2, kind: input, shape index: {}]   ;;  %s1997_s3 = inlined_call_operand.vmem [shape: f32[8,128], index: 3, kind: output, shape index: {}]  }
   0x1   :  { %9 = vsyncpa [#allocation5], 0  ;;  %s1704_s12 = smov [#allocation2]  }
   0x2   :  { %s17_s13 = sshll.u32 %s1704_s12, 4  ;;  %s18_s13 = int_to_ptr.vmem [resolvable:$true] %s17_s13 }
   0x3   :  { %s1668_s14 = scalar_lea.vmem %s18_s13, 7424  ;;  %p1673_p1 = scmp.lt.s32.totalorder %s18_s13, %s18_s13 }
   0x4   :  { %p1669_p0 = scmp.ne.s32.totalorder %s18_s13, %s1668_s14  ;;  %p1674_p2 = scmp.lt.s32.totalorder %s1668_s14, %s1668_s14 }
   0x6   :  { %p1675_p3 = por %p1674_p2, %p1673_p1 }
   0x8   :  { %p1676_p4 = pnand %p1675_p3, %p1669_p0 }
   0xa   :  { %1679 = shalt.err (!%p1676_p4)
}
   0xb   :  { %s1705_s15 = smov 128   ;;  %s1706_s16 = smov 8  }
   0xc   :  { %23 = dma.hbm_to_vmem [thread:$0]  %s1995_s1, 7424, %s18_s13, [#allocation3], %s1705_s15, %s1705_s15, %s1706_s16  }
   0xd   :  { %s1707_s19 = smov [#allocation4]  }
   0xe   :  { %s29_s20 = sshll.u32 %s1707_s19, 4  ;;  %s30_s20 = int_to_ptr.vmem [resolvable:$true] %s29_s20 }
   0xf   :  { %s1688_s21 = scalar_lea.vmem %s30_s20, 4608  ;;  %p1693_p6 = scmp.lt.s32.totalorder %s30_s20, %s30_s20 }
  0x10   :  { %p1689_p5 = scmp.ne.s32.totalorder %s30_s20, %s1688_s21  ;;  %p1694_p7 = scmp.lt.s32.totalorder %s1688_s21, %s1688_s21 }
  0x12   :  { %p1695_p8 = por %p1694_p7, %p1693_p6 }
  0x14   :  { %p1696_p9 = pnand %p1695_p8, %p1689_p5 }
  0x16   :  { %1699 = shalt.err (!%p1696_p9)
}
  0x17   :  { %s1708_s22 = smov 256   ;;  %s1709_s23 = smov 16  }
  0x18   :  { %35 = dma.hbm_to_vmem [thread:$0]  %s1996_s2, 4608, %s30_s20, [#allocation5], %s1708_s22, %s1708_s22, %s1709_s23  }
  0x19   :  { %1700 = dma.done.wait [#allocation3], 7424  }
  0x1a   :  { %1701 = vsyncadd [#allocation3], 4294959872 }
  0x1b   :  { %1702 = dma.done.wait [#allocation5], 4608  }
  0x1c   :  { %1703 = vsyncadd [#allocation5], 4294962688  ;;  %v81_v0 = vld [vmem:[%s1994_s0 + $0x78] sm:$0xff]  ;;  %v80_v1 = vld [vmem:[%s1994_s0 + $0x70] sm:$0xff]  ;;  %vm1711_vm0 = vmmov 0   ;;  %vm454_vm1 = vcmask 1041409  }
  0x1d   :  { %1409 = vmatprep.subr.mxu0 %v81_v0  ;;  %v79_v2 = vld [vmem:[%s1994_s0 + $0x68] sm:$0xff]  ;;  %v78_v3 = vld [vmem:[%s1994_s0 + $0x60] sm:$0xff]  ;;  %v77_v5 = vld [vmem:[%s1994_s0 + $0x58] sm:$0xff]  ;;  %vm456_vm2 = vcmask 1042434   ;;  %vm458_vm3 = vcmask 1043459   ;;  %vm460_vm4 = vcmask 1044484  }
  0x1e   :  { %1410 = vmatpush3.msra.mxu0 %v81_v0  ;;  %v42_v4 = vld [vmem:[#allocation2] sm:$0xff]  ;;  %v76_v6 = vld [vmem:[%s1994_s0 + $0x50] sm:$0xff]  ;;  %v75_v7 = vld [vmem:[%s1994_s0 + $0x48] sm:$0xff]  ;;  %vm462_vm5 = vcmask 1045509   ;;  %vm464_vm6 = vcmask 1046534   ;;  %vm466_vm7 = vcmask 1047559  }
  0x1f   :  { %1411 = vmatprep.subr.mxu0 %v80_v1  ;;  %1441 = vmatprep.mubr.f32.mxu0 %v42_v4  ;;  %v74_v8 = vld [vmem:[%s1994_s0 + $0x40] sm:$0xff]  ;;  %v409_v9 = vld [vmem:[#allocation4 + $0xf8] sm:$0xff]  ;;  %v73_v11 = vld [vmem:[%s1994_s0 + $0x38] sm:$0xff]  ;;  %vm468_vm8 = vcmask 64512   ;;  %vm636_vm9 = vcmask 1041408   ;;  %s1714_s28 = smov 32  }
  0x20   :  { %1412 = vmatpush3.msra.mxu0 %v80_v1  ;;  %v408_v10 = vld [vmem:[#allocation4 + $0xf0] sm:$0xff]  ;;  %542 = vmatprep.subr.mxu1 %v409_v9  ;;  %v407_v12 = vld [vmem:[#allocation4 + $0xe8] sm:$0xff]  ;;  %v406_v13 = vld [vmem:[#allocation4 + $0xe0] sm:$0xff]  ;;  %vm760_vm10 = vcmask 261120   ;;  %vm643_vm11 = vcmask 523264   ;;  %vm1096_vm12 = vcmask 1043456  }
  0x21   :  { %1413 = vmatprep.subr.mxu0 %v79_v2  ;;  %543 = vmatpush1.msra.mxu1 %v408_v10  ;;  %v405_v14 = vld [vmem:[#allocation4 + $0xd8] sm:$0xff]  ;;  %v72_v15 = vld [vmem:[%s1994_s0 + $0x30] sm:$0xff]  ;;  %v404_v16 = vld [vmem:[#allocation4 + $0xd0] sm:$0xff]  ;;  %vm1098_vm13 = vcmask 1045504  }
  0x22   :  { %1414 = vmatpush3.msra.mxu0 %v79_v2  ;;  %544 = vmatprep.subr.mxu1 %v407_v12  ;;  %v403_v17 = vld [vmem:[#allocation4 + $0xc8] sm:$0xff]  ;;  %v71_v18 = vld [vmem:[%s1994_s0 + $0x28] sm:$0xff]  ;;  %v402_v19 = vld [vmem:[#allocation4 + $0xc0] sm:$0xff] }
  0x23   :  { %1415 = vmatprep.subr.mxu0 %v78_v3  ;;  %545 = vmatpush1.msra.mxu1 %v406_v13  ;;  %v401_v20 = vld [vmem:[#allocation4 + $0xb8] sm:$0xff]  ;;  %v70_v21 = vld [vmem:[%s1994_s0 + $0x20] sm:$0xff]  ;;  %v399_v23 = vld [vmem:[#allocation4 + $0xa8] sm:$0xff] }
  0x24   :  { %1416 = vmatpush3.msra.mxu0 %v78_v3  ;;  %546 = vmatprep.subr.mxu1 %v405_v14  ;;  %v400_v22 = vld [vmem:[#allocation4 + $0xb0] sm:$0xff]  ;;  %v69_v24 = vld [vmem:[%s1994_s0 + $0x18] sm:$0xff]  ;;  %v68_v25 = vld [vmem:[%s1994_s0 + $0x10] sm:$0xff] }
  0x25   :  { %1417 = vmatprep.subr.mxu0 %v77_v5  ;;  %547 = vmatpush1.msra.mxu1 %v404_v16  ;;  %v67_v26 = vld [vmem:[%s1994_s0 + $0x8] sm:$0xff]  ;;  %v66_v27 = vld [vmem:[%s1994_s0] sm:$0xff]  ;;  %v44_v29 = vld [vmem:[#allocation2 + $0x10] sm:$0xff]  ;;  %s1712_s0 = smov 64  }
  0x26   :  { %1418 = vmatpush3.msra.mxu0 %v77_v5  ;;  %548 = vmatprep.subr.mxu1 %v403_v17  ;;  %v43_v28 = vld [vmem:[#allocation2 + $0x8] sm:$0xff]  ;;  %v45_v30 = vld [vmem:[#allocation2 + $0x18] sm:$0xff]  ;;  %v46_v31 = vld [vmem:[#allocation2 + $0x20] sm:$0xff] }
  0x27   :  { %1419 = vmatprep.subr.mxu0 %v76_v6  ;;  %549 = vmatpush1.msra.mxu1 %v402_v19  ;;  %v47_v32 = vld [vmem:[#allocation2 + $0x28] sm:$0xff]  ;;  %v48_v33 = vld [vmem:[#allocation2 + $0x30] sm:$0xff]  ;;  %v49_v34 = vld [vmem:[#allocation2 + $0x38] sm:$0xff] }
  0x28   :  { %1420 = vmatpush3.msra.mxu0 %v76_v6  ;;  %550 = vmatprep.subr.mxu1 %v401_v20  ;;  %v50_v35 = vld [vmem:[#allocation2 + $0x40] sm:$0xff]  ;;  %v51_v36 = vld [vmem:[#allocation2 + $0x48] sm:$0xff]  ;;  %v52_v37 = vld [vmem:[#allocation2 + $0x50] sm:$0xff] }
  0x29   :  { %1421 = vmatprep.subr.mxu0 %v75_v7  ;;  %551 = vmatpush1.msra.mxu1 %v400_v22  ;;  %v53_v38 = vld [vmem:[#allocation2 + $0x58] sm:$0xff]  ;;  %v54_v39 = vld [vmem:[#allocation2 + $0x60] sm:$0xff]  ;;  %v55_v40 = vld [vmem:[#allocation2 + $0x68] sm:$0xff] }
  0x2a   :  { %1422 = vmatpush3.msra.mxu0 %v75_v7  ;;  %552 = vmatprep.subr.mxu1 %v399_v23  ;;  %v56_v41 = vld [vmem:[#allocation2 + $0x70] sm:$0xff]  ;;  %v57_v42 = vld [vmem:[#allocation2 + $0x78] sm:$0xff]  ;;  %v58_v43 = vld [vmem:[#allocation2 + $0x80] sm:$0xff] }
  0x2b   :  { %1423 = vmatprep.subr.mxu0 %v74_v8  ;;  %v59_v44 = vld [vmem:[#allocation2 + $0x88] sm:$0xff]  ;;  %v60_v45 = vld [vmem:[#allocation2 + $0x90] sm:$0xff]  ;;  %v61_v46 = vld [vmem:[#allocation2 + $0x98] sm:$0xff] }
  0x2c   :  { %1424 = vmatpush3.msra.mxu0 %v74_v8  ;;  %v62_v47 = vld [vmem:[#allocation2 + $0xa0] sm:$0xff]  ;;  %v63_v48 = vld [vmem:[#allocation2 + $0xa8] sm:$0xff]  ;;  %v64_v49 = vld [vmem:[#allocation2 + $0xb0] sm:$0xff]  ;;  %v1710_v8 = vmov 0.0  }
  0x2d   :  { %1425 = vmatprep.subr.mxu0 %v73_v11  ;;  %v65_v50 = vld [vmem:[#allocation2 + $0xb8] sm:$0xff]  ;;  %v398_v51 = vld [vmem:[#allocation4 + $0xa0] sm:$0xff]  ;;  %v397_v52 = vld [vmem:[#allocation4 + $0x98] sm:$0xff]  ;;  %606 = vmatprep.mubr.f32.mxu1 %v1710_v8 }
  0x2e   :  { %1426 = vmatpush3.msra.mxu0 %v73_v11  ;;  %553 = vmatpush1.msra.mxu1 %v398_v51  ;;  %v396_v53 = vld [vmem:[#allocation4 + $0x90] sm:$0xff]  ;;  %v395_v54 = vld [vmem:[#allocation4 + $0x88] sm:$0xff]  ;;  %v394_v55 = vld [vmem:[#allocation4 + $0x80] sm:$0xff] }
  0x2f   :  { %1427 = vmatprep.subr.mxu0 %v72_v15  ;;  %554 = vmatprep.subr.mxu1 %v397_v52  ;;  %v393_v56 = vld [vmem:[#allocation4 + $0x78] sm:$0xff]  ;;  %v392_v57 = vld [vmem:[#allocation4 + $0x70] sm:$0xff]  ;;  %v391_v58 = vld [vmem:[#allocation4 + $0x68] sm:$0xff] }
  0x30   :  { %1428 = vmatpush3.msra.mxu0 %v72_v15  ;;  %555 = vmatpush1.msra.mxu1 %v396_v53  ;;  %v390_v59 = vld [vmem:[#allocation4 + $0x60] sm:$0xff]  ;;  %v389_v60 = vld [vmem:[#allocation4 + $0x58] sm:$0xff]  ;;  %v388_v61 = vld [vmem:[#allocation4 + $0x50] sm:$0xff] }
  0x31   :  { %1429 = vmatprep.subr.mxu0 %v71_v18  ;;  %556 = vmatprep.subr.mxu1 %v395_v54  ;;  %v387_v62 = vld [vmem:[#allocation4 + $0x48] sm:$0xff]  ;;  %v386_v63 = vld [vmem:[#allocation4 + $0x40] sm:$0xff]  ;;  %v385_v0 = vld [vmem:[#allocation4 + $0x38] sm:$0xff] }
  0x32   :  { %1430 = vmatpush3.msra.mxu0 %v71_v18  ;;  %557 = vmatpush1.msra.mxu1 %v394_v55  ;;  %v384_v1 = vld [vmem:[#allocation4 + $0x30] sm:$0xff]  ;;  %v383_v2 = vld [vmem:[#allocation4 + $0x28] sm:$0xff]  ;;  %v382_v3 = vld [vmem:[#allocation4 + $0x20] sm:$0xff] }
  0x33   :  { %1431 = vmatprep.subr.mxu0 %v70_v21  ;;  %558 = vmatprep.subr.mxu1 %v393_v56  ;;  %v381_v4 = vld [vmem:[#allocation4 + $0x18] sm:$0xff]  ;;  %v380_v5 = vld [vmem:[#allocation4 + $0x10] sm:$0xff]  ;;  %v379_v6 = vld [vmem:[#allocation4 + $0x8] sm:$0xff] }
  0x34   :  { %1432 = vmatpush3.msra.mxu0 %v70_v21  ;;  %559 = vmatpush1.msra.mxu1 %v392_v57  ;;  %v378_v7 = vld [vmem:[#allocation4] sm:$0xff] }
  0x35   :  { %1433 = vmatprep.subr.mxu0 %v69_v24  ;;  %560 = vmatprep.subr.mxu1 %v391_v58 }
  0x36   :  { %1434 = vmatpush3.msra.mxu0 %v69_v24  ;;  %561 = vmatpush1.msra.mxu1 %v390_v59 }
  0x37   :  { %1435 = vmatprep.subr.mxu0 %v68_v25  ;;  %562 = vmatprep.subr.mxu1 %v389_v60 }
  0x38   :  { %1436 = vmatpush3.msra.mxu0 %v68_v25  ;;  %563 = vmatpush1.msra.mxu1 %v388_v61 }
  0x39   :  { %1437 = vmatprep.subr.mxu0 %v67_v26  ;;  %564 = vmatprep.subr.mxu1 %v387_v62 }
  0x3a   :  { %1438 = vmatpush3.msra.mxu0 %v67_v26  ;;  %565 = vmatpush1.msra.mxu1 %v386_v63 }
  0x3b   :  { %1439 = vmatprep.subr.mxu0 %v66_v27  ;;  %566 = vmatprep.subr.mxu1 %v385_v0 }
  0x3c   :  { %1440 = vmatpush3.msra.mxu0 %v66_v27  ;;  %567 = vmatpush1.msra.mxu1 %v384_v1 }
  0x3d   :  { %1442 = vmatmul.mubr.f32.vlgmr.msra.gmra.mxu0 %v43_v28  ;;  %568 = vmatprep.subr.mxu1 %v383_v2  ;;  %v1798_v2 = vld [vmem:[#allocation2 + $0xf8] sm:$0xff] }
  0x3e   :  { %1444 = vmatprep.mubr.f32.mxu0 %v44_v29  ;;  %569 = vmatpush1.msra.mxu1 %v382_v3  ;;  %v1802_v3 = vld [vmem:[#allocation2 + $0xf0] sm:$0xff] }
  0x3f   :  { %570 = vmatprep.subr.mxu1 %v381_v4  ;;  %v1806_v4 = vld [vmem:[#allocation2 + $0xe8] sm:$0xff] }
  0x40   :  { %571 = vmatpush1.msra.mxu1 %v380_v5  ;;  %v1810_v5 = vld [vmem:[#allocation2 + $0xe0] sm:$0xff] }
  0x41   :  { %1445 = vmatmul.mubr.f32.gmra.mxu0 %v45_v30  ;;  %572 = vmatprep.subr.mxu1 %v379_v6  ;;  %v1814_v6 = vld [vmem:[#allocation2 + $0xd8] sm:$0xff] }
  0x42   :  { %1447 = vmatprep.mubr.f32.mxu0 %v46_v31  ;;  %573 = vmatpush1.msra.mxu1 %v378_v7  ;;  %v1817_v7 = vld [vmem:[#allocation2 + $0xd0] sm:$0xff] }
  0x43   :  { %1477 = vmatprep.subr.mxu1 %v1710_v8 }
  0x45   :  { %1448 = vmatmul.mubr.f32.gmra.mxu0 %v47_v32 }
  0x46   :  { %1450 = vmatprep.mubr.f32.mxu0 %v48_v33 }
  0x49   :  { %1451 = vmatmul.mubr.f32.gmra.mxu0 %v49_v34 }
  0x4a   :  { %1453 = vmatprep.mubr.f32.mxu0 %v50_v35 }
  0x4d   :  { %1454 = vmatmul.mubr.f32.gmra.mxu0 %v51_v36 }
  0x4e   :  { %1456 = vmatprep.mubr.f32.mxu0 %v52_v37 }
  0x51   :  { %1457 = vmatmul.mubr.f32.gmra.mxu0 %v53_v38 }
  0x52   :  { %1459 = vmatprep.mubr.f32.mxu0 %v54_v39 }
  0x55   :  { %1460 = vmatmul.mubr.f32.gmra.mxu0 %v55_v40 }
  0x56   :  { %1462 = vmatprep.mubr.f32.mxu0 %v56_v41 }
  0x59   :  { %1463 = vmatmul.mubr.f32.gmra.mxu0 %v57_v42 }
  0x5a   :  { %1465 = vmatprep.mubr.f32.mxu0 %v58_v43 }
  0x5d   :  { %1466 = vmatmul.mubr.f32.gmra.mxu0 %v59_v44 }
  0x5e   :  { %1468 = vmatprep.mubr.f32.mxu0 %v60_v45 }
  0x61   :  { %1469 = vmatmul.mubr.f32.gmra.mxu0 %v61_v46 }
  0x62   :  { %1471 = vmatprep.mubr.f32.mxu0 %v62_v47  ;;  %v411_v47 = vld [vmem:[#allocation4 + $0x108] sm:$0xff] }
  0x63   :  { %501 = vmatprep.subr.mxu0 %v411_v47 }
  0x65   :  { %1472 = vmatmul.mubr.f32.gmra.mxu0 %v63_v48  ;;  %v410_v48 = vld [vmem:[#allocation4 + $0x100] sm:$0xff] }
  0x66   :  { %1474 = vmatprep.mubr.f32.mxu0 %v64_v49  ;;  %502 = vmatpush1.msra.mxu0 %v410_v48 }
  0x67   :  { %1515 = vmatprep.subr.mxu0 %v1710_v8 }
  0x69   :  { %1475 = vmatmul.mubr.f32.gmra.mxu0 %v65_v50 }
  0x6a   :  { %535 = vmatprep.mubr.f32.mxu0 %v1710_v8 }
  0xfd   :  { %v1443_v9 = vpop.f32.mrf.mxu0 }
  0xff   :  { %v148_v10 = vpop.f32.mrf.mxu0 }
 0x101   :  { %v1446_v11 = vpop.f32.mrf.mxu0 }
 0x103   :  { %v158_v12 = vpop.f32.mrf.mxu0 }
 0x105   :  { %v1449_v13 = vpop.f32.mrf.mxu0 }
 0x106   :  { %v268_v18 = vmax.f32 %v1443_v9, %v1449_v13  ;;  %v1820_v9 = vld [vmem:[#allocation2 + $0xc8] sm:$0xff] }
 0x107   :  { %v168_v14 = vpop.f32.mrf.mxu0 }
 0x108   :  { %v267_v16 = vmax.f32 %v148_v10, %v168_v14  ;;  %v1826_v10 = vld [vmem:[#allocation2 + $0xc0] sm:$0xff] }
 0x109   :  { %v1452_v15 = vpop.f32.mrf.mxu0 }
 0x10a   :  { %v270_v19 = vmax.f32 %v1446_v11, %v1452_v15  ;;  %v271_v22 = vmax.f32 %v267_v16, %v268_v18 }
 0x10b   :  { %v178_v17 = vpop.f32.mrf.mxu0 }
 0x10c   :  { %v269_v20 = vmax.f32 %v158_v12, %v178_v17 }
 0x10d   :  { %v1792_v21 = vpop.f32.mrf.mxu0 }
 0x10e   :  { %v272_v23 = vmax.f32 %v269_v20, %v270_v19  ;;  %v283_v24 = vmul.f32 %v1792_v21, %v1792_v21 }
 0x10f   :  { %v188_v25 = vpop.f32.mrf.mxu0 }
 0x110   :  { %306 = vadd.xlane.f32.xlu1 %v283_v24  ;;  %v273_v26 = vmax.f32 %v271_v22, %v272_v23  ;;  %v282_v27 = vmul.f32 %v188_v25, %v188_v25 }
 0x111   :  { %v1458_v28 = vpop.f32.mrf.mxu0 }
 0x112   :  { %607 = vmatmul.mubr.f32.vlgmr.msra.gmra.mxu1 %v273_v26  ;;  %300 = vadd.xlane.f32.xlu0 %v282_v27  ;;  %v285_v30 = vmul.f32 %v1458_v28, %v1458_v28 }
 0x113   :  { %v198_v29 = vpop.f32.mrf.mxu0  ;;  %1478 = vmatpush3.msra.mxu1 %v1798_v2  ;;  %1493 = vmatprep.mubr.msk.f32.mxu1 %vm1711_vm0, %v1710_v8 }
 0x114   :  { %v284_v33 = vmul.f32 %v198_v29, %v198_v29  ;;  %1479 = vmatprep.subr.mxu1 %v1710_v8 }
 0x115   :  { %v1461_v31 = vpop.f32.mrf.mxu0  ;;  %1480 = vmatpush3.msra.mxu1 %v1802_v3 }
 0x116   :  { %318 = vadd.xlane.f32.xlu0 %v285_v30  ;;  %v287_v36 = vmul.f32 %v1461_v31, %v1461_v31  ;;  %1481 = vmatprep.subr.mxu1 %v1710_v8 }
 0x117   :  { %v208_v32 = vpop.f32.mrf.mxu0  ;;  %1482 = vmatpush3.msra.mxu1 %v1806_v4 }
 0x118   :  { %v286_v40 = vmul.f32 %v208_v32, %v208_v32  ;;  %1483 = vmatprep.subr.mxu1 %v1710_v8 }
 0x119   :  { %v1464_v34 = vpop.f32.mrf.mxu0  ;;  %1484 = vmatpush3.msra.mxu1 %v1810_v5 }
 0x11a   :  { %312 = vadd.xlane.f32.xlu0 %v284_v33  ;;  %v289_v52 = vmul.f32 %v1464_v34, %v1464_v34  ;;  %1485 = vmatprep.subr.mxu1 %v1710_v8 }
 0x11b   :  { %v218_v35 = vpop.f32.mrf.mxu0  ;;  %1486 = vmatpush3.msra.mxu1 %v1814_v6 }
 0x11c   :  { %v288_v49 = vmul.f32 %v218_v35, %v218_v35  ;;  %1487 = vmatprep.subr.mxu1 %v1710_v8 }
 0x11d   :  { %v1467_v37 = vpop.f32.mrf.mxu0  ;;  %1488 = vmatpush3.msra.mxu1 %v1817_v7 }
 0x11e   :  { %330 = vadd.xlane.f32.xlu0 %v287_v36  ;;  %v291_v38 = vmul.f32 %v1467_v37, %v1467_v37  ;;  %v275_v61 = vmul.f32 %v1467_v37, %v1792_v21  ;;  %1489 = vmatprep.subr.mxu1 %v1710_v8  ;;  %v420_v37 = vlaneseq }
 0x11f   :  { %v228_v39 = vpop.f32.mrf.mxu0  ;;  %1490 = vmatpush3.msra.mxu1 %v1820_v9 }
 0x120   :  { %308 = vadd.xlane.f32.xlu1 %v291_v38  ;;  %v290_v44 = vmul.f32 %v228_v39, %v228_v39  ;;  %v274_v55 = vmul.f32 %v228_v39, %v188_v25  ;;  %1491 = vmatprep.subr.mxu1 %v1710_v8 }
 0x121   :  { %v1470_v41 = vpop.f32.mrf.mxu0  ;;  %1492 = vmatpush3.msra.mxu1 %v1826_v10 }
 0x122   :  { %324 = vadd.xlane.f32.xlu0 %v286_v40  ;;  %v293_v42 = vmul.f32 %v1470_v41, %v1470_v41  ;;  %v277_v63 = vmul.f32 %v1470_v41, %v1458_v28  ;;  %1494 = vmatmul.mubr.f32.vlgmr.msra.gmra.mxu1 %v1710_v8  ;;  %v421_v41 = vand.u32 127, %v420_v37 }
 0x123   :  { %v238_v43 = vpop.f32.mrf.mxu0  ;;  %1496 = vmatprep.subr.mxu1 %v1710_v8  ;;  %1512 = vmatprep.mubr.msk.f32.mxu1 %vm1711_vm0, %v1710_v8 }
 0x124   :  { %320 = vadd.xlane.f32.xlu1 %v293_v42  ;;  %v292_v46 = vmul.f32 %v238_v43, %v238_v43  ;;  %v276_v58 = vmul.f32 %v238_v43, %v198_v29  ;;  %1497 = vmatpush3.msra.mxu1 %v1798_v2  ;;  %v1851_v42 = vshrl.u32 %v420_v37, 7 }
 0x125   :  { %v1473_v45 = vpop.f32.mrf.mxu0  ;;  %1498 = vmatprep.subr.mxu1 %v1710_v8 }
 0x126   :  { %302 = vadd.xlane.f32.xlu0 %v290_v44  ;;  %v295_v50 = vmul.f32 %v1473_v45, %v1473_v45  ;;  %v279_v0 = vmul.f32 %v1473_v45, %v1461_v31  ;;  %1499 = vmatpush3.msra.mxu1 %v1802_v3  ;;  %v622_v37 = vsub.s32 1, %v1851_v42 }
 0x127   :  { %v248_v51 = vpop.f32.mrf.mxu0  ;;  %1500 = vmatprep.subr.mxu1 %v1710_v8 }
 0x128   :  { %314 = vadd.xlane.f32.xlu1 %v292_v46  ;;  %v294_v54 = vmul.f32 %v248_v51, %v248_v51  ;;  %v278_v60 = vmul.f32 %v248_v51, %v208_v32  ;;  %1501 = vmatpush3.msra.mxu1 %v1806_v4 }
 0x129   :  { %v1476_v53 = vpop.f32.mrf.mxu0  ;;  %1502 = vmatprep.subr.mxu1 %v1710_v8 }
 0x12a   :  { %336 = vadd.xlane.f32.xlu0 %v288_v49  ;;  %v297_v59 = vmul.f32 %v1476_v53, %v1476_v53  ;;  %v281_v1 = vmul.f32 %v1476_v53, %v1464_v34  ;;  %1503 = vmatpush3.msra.mxu1 %v1810_v5  ;;  %v424_v49 = vsub.s32 %v421_v41, %v1851_v42 }
 0x12b   :  { %v258_v56 = vpop.f32.mrf.mxu0  ;;  %1504 = vmatprep.subr.mxu1 %v1710_v8 }
 0x12c   :  { %332 = vadd.xlane.f32.xlu1 %v295_v50  ;;  %v296_v57 = vmul.f32 %v258_v56, %v258_v56  ;;  %v280_v62 = vmul.f32 %v258_v56, %v218_v35  ;;  %1505 = vmatpush3.msra.mxu1 %v1814_v6 }
 0x12d   :  { %1506 = vmatprep.subr.mxu1 %v1710_v8 }
 0x12e   :  { %342 = vadd.xlane.f32.xlu0 %v289_v52  ;;  %1507 = vmatpush3.msra.mxu1 %v1817_v7 }
 0x12f   :  { %1508 = vmatprep.subr.mxu1 %v1710_v8 }
 0x130   :  { %326 = vadd.xlane.f32.xlu1 %v294_v54  ;;  %1509 = vmatpush3.msra.mxu1 %v1820_v9 }
 0x131   :  { %1510 = vmatprep.subr.mxu1 %v1710_v8 }
 0x132   :  { %298 = vadd.xlane.f32.xlu0 %v274_v55  ;;  %1511 = vmatpush3.msra.mxu1 %v1826_v10 }
 0x133   :  { %1534 = vmatprep.subr.mxu1 %v1710_v8 }
 0x134   :  { %338 = vadd.xlane.f32.xlu1 %v296_v57 }
 0x136   :  { %310 = vadd.xlane.f32.xlu0 %v276_v58 }
 0x138   :  { %344 = vadd.xlane.f32.xlu1 %v297_v59 }
 0x13a   :  { %322 = vadd.xlane.f32.xlu0 %v278_v60 }
 0x13c   :  { %304 = vadd.xlane.f32.xlu1 %v275_v61 }
 0x13e   :  { %334 = vadd.xlane.f32.xlu0 %v280_v62 }
 0x140   :  { %316 = vadd.xlane.f32.xlu1 %v277_v63 }
 0x144   :  { %328 = vadd.xlane.f32.xlu1 %v279_v0 }
 0x148   :  { %340 = vadd.xlane.f32.xlu1 %v281_v1 }
 0x199   :  { %v307_v14 = vpop.xlane.xlu1 %306 }
 0x19b   :  { %v301_v11 = vpop.xlane.xlu0 %300 }
 0x19f   :  { %v319_v12 = vpop.xlane.xlu0 %318 }
 0x1a3   :  { %v313_v13 = vpop.xlane.xlu0 %312 }
 0x1a7   :  { %v331_v15 = vpop.xlane.xlu0 %330 }
 0x1a9   :  { %v309_v16 = vpop.xlane.xlu1 %308 }
 0x1aa   :  { %v347_v20 = vmul.f32 %v309_v16, %v307_v14 }
 0x1ab   :  { %v325_v17 = vpop.xlane.xlu0 %324 }
 0x1ac   :  { %v355_v26 = vmax.f32 %v347_v20, 1e-16 }
 0x1ad   :  { %v321_v18 = vpop.xlane.xlu1 %320 }
 0x1ae   :  { %v349_v27 = vmul.f32 %v321_v18, %v319_v12 }
 0x1af   :  { %v303_v19 = vpop.xlane.xlu0 %302 }
 0x1b0   :  { %v346_v21 = vmul.f32 %v303_v19, %v301_v11  ;;  %v357_v31 = vmax.f32 %v349_v27, 1e-16 }
 0x1b1   :  { %v315_v22 = vpop.xlane.xlu1 %314 }
 0x1b2   :  { %v354_v23 = vmax.f32 %v346_v21, 1e-16  ;;  %v348_v24 = vmul.f32 %v315_v22, %v313_v13 }
 0x1b3   :  { %v337_v25 = vpop.xlane.xlu0 %336 }
 0x1b4   :  { %1620 = vrsqrt.f32 %v354_v23  ;;  %v356_v28 = vmax.f32 %v348_v24, 1e-16 }
 0x1b5   :  { %v333_v29 = vpop.xlane.xlu1 %332 }
 0x1b6   :  { %1622 = vrsqrt.f32 %v356_v28  ;;  %v351_v32 = vmul.f32 %v333_v29, %v331_v15 }
 0x1b7   :  { %v343_v30 = vpop.xlane.xlu0 %342  ;;  %1624 = vrsqrt.f32 %v355_v26 }
 0x1b8   :  { %1626 = vrsqrt.f32 %v357_v31  ;;  %v359_v35 = vmax.f32 %v351_v32, 1e-16 }
 0x1b9   :  { %v327_v33 = vpop.xlane.xlu1 %326 }
 0x1ba   :  { %v350_v34 = vmul.f32 %v327_v33, %v325_v17 }
 0x1bb   :  { %v299_v38 = vpop.xlane.xlu0 %298 }
 0x1bc   :  { %v358_v36 = vmax.f32 %v350_v34, 1e-16 }
 0x1bd   :  { %v339_v39 = vpop.xlane.xlu1 %338 }
 0x1be   :  { %1628 = vrsqrt.f32 %v358_v36  ;;  %v352_v40 = vmul.f32 %v339_v39, %v337_v25  ;;  %v614_v36 = vld [vmem:[#allocation4 + $0x110] ss:$8 sm:$0x3] }
 0x1bf   :  { %1630 = vrsqrt.f32 %v359_v35  ;;  %v311_v47 = vpop.xlane.xlu0 %310  ;;  %v618_v35 = vsub.s32 0, %v1851_v42  ;;  %v623_v41 = vrot.slane %v614_v36, %v622_v37 }
 0x1c0   :  { %v360_v43 = vmax.f32 %v352_v40, 1e-16 }
 0x1c1   :  { %v1621_v44 = vpop.eup %1620  ;;  %v345_v45 = vpop.xlane.xlu1 %344 }
 0x1c2   :  { %1632 = vrsqrt.f32 %v360_v43  ;;  %v353_v46 = vmul.f32 %v345_v45, %v343_v30  ;;  %v370_v50 = vmul.f32 %v1621_v44, %v299_v38  ;;  %v619_v38 = vrot.slane %v614_v36, %v618_v35 }
 0x1c3   :  { %v1623_v48 = vpop.eup %1622  ;;  %v323_v59 = vpop.xlane.xlu0 %322 }
 0x1c4   :  { %v361_v51 = vmax.f32 %v353_v46, 1e-16  ;;  %v1625_v52 = vpop.eup %1624  ;;  %v372_v55 = vmul.f32 %v1623_v48, %v311_v47  ;;  %v425_v56 = vrot.slane %v370_v50, %v424_v49 }
 0x1c5   :  { %v305_v53 = vpop.xlane.xlu1 %304  ;;  %v1627_v58 = vpop.eup %1626 }
 0x1c6   :  { %1634 = vrsqrt.f32 %v361_v51  ;;  %v371_v54 = vmul.f32 %v1625_v52, %v305_v53  ;;  %v433_v0 = vrot.slane %v372_v55, %v424_v49 }
 0x1c7   :  { %v335_v19 = vpop.xlane.xlu0 %334 }
 0x1c8   :  { %v429_v57 = vrot.slane %v371_v54, %v424_v49 }
 0x1c9   :  { %v317_v60 = vpop.xlane.xlu1 %316 }
 0x1ca   :  { %v455_v61 = vsel %vm454_vm1, %v429_v57, %v425_v56  ;;  %v373_v62 = vmul.f32 %v1627_v58, %v317_v60 }
 0x1cb   :  { %v1629_v63 = vpop.eup %1628  ;;  %v457_v13 = vsel %vm456_vm2, %v433_v0, %v455_v61 }
 0x1cc   :  { %v374_v1 = vmul.f32 %v1629_v63, %v323_v59  ;;  %v437_v11 = vrot.slane %v373_v62, %v424_v49  ;;  %v1631_v12 = vpop.eup %1630  ;;  %v1713_v59 = vmov 0  }
 0x1cd   :  { %v329_v14 = vpop.xlane.xlu1 %328  ;;  %1618 = vset.pattern.permute.xlu1 %v1713_v59  ;;  %1619 = vset.pattern.permute.xlu0 %v1713_v59 }
 0x1ce   :  { %v441_v15 = vrot.slane %v374_v1, %v424_v49  ;;  %v459_v16 = vsel %vm458_vm3, %v437_v11, %v457_v13  ;;  %v375_v17 = vmul.f32 %v1631_v12, %v329_v14  ;;  %v637_v1 = vsel %vm636_vm9, 1.0, %v1710_v8 }
 0x1cf   :  { %v1633_v18 = vpop.eup %1632  ;;  %v638_v11 = vsub.f32 1.0, %v637_v1 }
 0x1d0   :  { %v376_v20 = vmul.f32 %v1633_v18, %v335_v19  ;;  %v445_v21 = vrot.slane %v375_v17, %v424_v49  ;;  %v461_v22 = vsel %vm460_vm4, %v441_v15, %v459_v16 }
 0x1d1   :  { %v341_v25 = vpop.xlane.xlu1 %340 }
 0x1d2   :  { %v449_v24 = vrot.slane %v376_v20, %v424_v49  ;;  %v463_v26 = vsel %vm462_vm5, %v445_v21, %v461_v22  ;;  %v608_v31 = vpop.f32.mrf.mxu1 }
 0x1d3   :  { %v1635_v23 = vpop.eup %1634 }
 0x1d4   :  { %v377_v27 = vmul.f32 %v1635_v23, %v341_v25  ;;  %v465_v29 = vsel %vm464_vm6, %v449_v24, %v463_v26  ;;  %v610_v32 = vpop.f32.mrf.mxu1 }
 0x1d6   :  { %v453_v28 = vrot.slane %v377_v27, %v424_v49 }
 0x1d8   :  { %v467_v30 = vsel %vm466_vm7, %v453_v28, %v465_v29 }
 0x1d9   :  { %1300 = vmatmul.mubr.msk.f32.vlgmr.msra.gmra.mxu0 %vm468_vm8, %v467_v30 }
 0x1da   :  { %1516 = vmatpush3.msra.mxu0 %v1798_v2  ;;  %1531 = vmatprep.mubr.msk.f32.mxu0 %vm1711_vm0, %v1710_v8 }
 0x1db   :  { %1517 = vmatprep.subr.mxu0 %v1710_v8 }
 0x1dc   :  { %1518 = vmatpush3.msra.mxu0 %v1802_v3 }
 0x1dd   :  { %1519 = vmatprep.subr.mxu0 %v1710_v8 }
 0x1de   :  { %1520 = vmatpush3.msra.mxu0 %v1806_v4 }
 0x1df   :  { %1521 = vmatprep.subr.mxu0 %v1710_v8 }
 0x1e0   :  { %1522 = vmatpush3.msra.mxu0 %v1810_v5 }
 0x1e1   :  { %1523 = vmatprep.subr.mxu0 %v1710_v8 }
 0x1e2   :  { %1524 = vmatpush3.msra.mxu0 %v1814_v6  ;;  %v713_v33 = vpop.f32.mrf.mxu1 }
 0x1e3   :  { %1525 = vmatprep.subr.mxu0 %v1710_v8 }
 0x1e4   :  { %1526 = vmatpush3.msra.mxu0 %v1817_v7  ;;  %v1495_v34 = vpop.f32.mrf.mxu1 }
 0x1e5   :  { %1527 = vmatprep.subr.mxu0 %v1710_v8 }
 0x1e6   :  { %1528 = vmatpush3.msra.mxu0 %v1820_v9 }
 0x1e7   :  { %1529 = vmatprep.subr.mxu0 %v1710_v8 }
 0x1e8   :  { %1530 = vmatpush3.msra.mxu0 %v1826_v10 }
 0x1e9   :  { %1553 = vmatprep.subr.mxu0 %v1710_v8 }
 0x299   :  { %v537_v39 = vpop.f32.mrf.mxu0 }
 0x29a   :  { %v609_v40 = vadd.f32 %v608_v31, %v537_v39 }
 0x29b   :  { %v539_v43 = vpop.f32.mrf.mxu0 }
 0x29c   :  { %v626_v44 = vadd.f32 %v619_v38, %v609_v40  ;;  %v611_v45 = vadd.f32 %v610_v32, %v539_v43 }
 0x29e   :  { %v627_v46 = vadd.f32 %v623_v41, %v611_v45  ;;  %v875_v47 = vrot.slane %v626_v44, 4  ;;  %v763_v48 = vrot.slane %v626_v44, 2  ;;  %v985_v49 = vrot.slane %v626_v44, 6 }
 0x2a0   :  { %v640_v50 = vrot.slane %v627_v46, 4  ;;  %v765_v51 = vrot.slane %v627_v46, 2  ;;  %v1875_v52 = vsel %vm636_vm9, %v875_v47, %v627_v46  ;;  %v987_v53 = vrot.slane %v627_v46, 6 }
 0x2a2   :  { %v642_v42 = vsel %vm636_vm9, %v626_v44, %v640_v50  ;;  %v767_v54 = vsel %vm636_vm9, %v763_v48, %v765_v51  ;;  %v1880_v55 = vsel %vm636_vm9, %v985_v49, %v987_v53 }
 0x2a3   :  { %v717_v56 = vadd.f32 %v713_v33, %v642_v42 }
 0x2a5   :  { %1636 = vtanh.f32 %v717_v56  ;;  %v718_v58 = vmul.f32 0.5, %v717_v56 }
 0x2a7   :  { %1638 = vtanh.f32 %v718_v58 }
 0x2b2   :  { %v1637_v57 = vpop.eup %1636 }
 0x2b3   :  { %725 = vrot.lane.b32.xlu0 %v1637_v57, %s1712_s0 }
 0x2b4   :  { %v1639_v60 = vpop.eup %1638 }
 0x2b5   :  { %v720_v61 = vadd.f32 1.0, %v1639_v60 }
 0x2b7   :  { %v721_v62 = vmul.f32 0.5, %v720_v61 }
 0x2b9   :  { %v723_v12 = vmul.f32 0.0, %v721_v62 }
 0x325   :  { %v726_v63 = vpop.permute.xlu0 %725 }
 0x326   :  { %v728_v0 = vmul.f32 %v726_v63, %v721_v62 }
 0x328   :  { %730 = vrot.lane.b32.xlu1 %v728_v0, %s1714_s28 }
 0x32c   :  { %742 = vperm.xlu1 %1618, %v637_v1  }
 0x330   :  { %748 = vperm.xlu1 %1618, %v638_v11  }
 0x39a   :  { %v731_v13 = vpop.permute.xlu1 %730 }
 0x39b   :  { %v733_v14 = vadd.f32 %v731_v13, %v723_v12 }
 0x39d   :  { %1640 = vtanh.f32 %v733_v14 }
 0x3a7   :  { %v1887_v16 = vpop.permute.xlu1 %742 }
 0x3aa   :  { %v1641_v15 = vpop.eup %1640 }
 0x3ab   :  { %736 = vrot.lane.b32.xlu0 %v1641_v15, %s1712_s0  ;;  %v1891_v19 = vpop.permute.xlu1 %748 }
 0x41d   :  { %v737_v17 = vpop.permute.xlu0 %736 }
 0x41e   :  { %v1889_v18 = vmul.f32 %v737_v17, %v721_v62 }
 0x420   :  { %v751_v20 = vmul.f32 %v1891_v19, %v1889_v18  ;;  %v745_v21 = vmul.f32 %v1887_v16, %v1889_v18 }
 0x422   :  { %757 = vrot.lane.b32.xlu0 %v751_v20, %s1712_s0  ;;  %753 = vrot.lane.b32.xlu1 %v745_v21, %s1714_s28  ;;  %v1120_v20 = vld [vmem:[#allocation2 + $0x128] sm:$0xff]  ;;  %v1119_v21 = vld [vmem:[#allocation2 + $0x120] sm:$0xff] }
 0x494   :  { %v758_v22 = vpop.permute.xlu0 %757  ;;  %v754_v23 = vpop.permute.xlu1 %753 }
 0x495   :  { %v761_v24 = vsel %vm760_vm10, %v754_v23, %v758_v22  ;;  %v1118_v23 = vld [vmem:[#allocation2 + $0x118] sm:$0xff] }
 0x496   :  { %1513 = vmatmul.mubr.msk.f32.vlgmr.msra.gmra.mxu1 %vm643_vm11, %v761_v24  ;;  %v1117_v24 = vld [vmem:[#allocation2 + $0x110] sm:$0xff] }
 0x497   :  { %1535 = vmatpush3.msra.mxu1 %v1798_v2  ;;  %1550 = vmatprep.mubr.msk.f32.mxu1 %vm1711_vm0, %v1710_v8 }
 0x498   :  { %1536 = vmatprep.subr.mxu1 %v1710_v8 }
 0x499   :  { %1537 = vmatpush3.msra.mxu1 %v1802_v3 }
 0x49a   :  { %1538 = vmatprep.subr.mxu1 %v1710_v8 }
 0x49b   :  { %1539 = vmatpush3.msra.mxu1 %v1806_v4 }
 0x49c   :  { %1540 = vmatprep.subr.mxu1 %v1710_v8 }
 0x49d   :  { %1541 = vmatpush3.msra.mxu1 %v1810_v5 }
 0x49e   :  { %1542 = vmatprep.subr.mxu1 %v1710_v8 }
 0x49f   :  { %1543 = vmatpush3.msra.mxu1 %v1814_v6 }
 0x4a0   :  { %1544 = vmatprep.subr.mxu1 %v1710_v8 }
 0x4a1   :  { %1545 = vmatpush3.msra.mxu1 %v1817_v7 }
 0x4a2   :  { %1546 = vmatprep.subr.mxu1 %v1710_v8 }
 0x4a3   :  { %1547 = vmatpush3.msra.mxu1 %v1820_v9 }
 0x4a4   :  { %1548 = vmatprep.subr.mxu1 %v1710_v8 }
 0x4a5   :  { %1549 = vmatpush3.msra.mxu1 %v1826_v10 }
 0x4a6   :  { %1572 = vmatprep.subr.mxu1 %v1710_v8 }
 0x556   :  { %v837_v2 = vpop.f32.mrf.mxu1 }
 0x557   :  { %v841_v3 = vadd.f32 %v837_v2, %v767_v54  ;;  %v1116_v2 = vld [vmem:[#allocation2 + $0x108] sm:$0xff] }
 0x558   :  { %v1514_v4 = vpop.f32.mrf.mxu1 }
 0x559   :  { %1642 = vtanh.f32 %v841_v3  ;;  %v842_v6 = vmul.f32 0.5, %v841_v3  ;;  %v1115_v3 = vld [vmem:[#allocation2 + $0x100] sm:$0xff] }
 0x55a   :  { %v1217_v4 = vld [vmem:[#allocation2 + $0x1c0] sm:$0xff] }
 0x55b   :  { %1644 = vtanh.f32 %v842_v6  ;;  %v1215_v6 = vld [vmem:[#allocation2 + $0x1b0] sm:$0xff] }
 0x566   :  { %v1643_v5 = vpop.eup %1642 }
 0x567   :  { %849 = vrot.lane.b32.xlu1 %v1643_v5, %s1712_s0  ;;  %v1216_v5 = vld [vmem:[#allocation2 + $0x1b8] sm:$0xff] }
 0x568   :  { %v1645_v7 = vpop.eup %1644 }
 0x569   :  { %v844_v25 = vadd.f32 1.0, %v1645_v7 }
 0x56b   :  { %v845_v26 = vmul.f32 0.5, %v844_v25 }
 0x56d   :  { %v847_v28 = vmul.f32 %v845_v26, %v733_v14 }
 0x5d9   :  { %v850_v27 = vpop.permute.xlu1 %849 }
 0x5da   :  { %v852_v9 = vmul.f32 %v850_v27, %v845_v26  ;;  %v1214_v27 = vld [vmem:[#allocation2 + $0x1a8] sm:$0xff] }
 0x5dc   :  { %854 = vrot.lane.b32.xlu0 %v852_v9, %s1714_s28 }
 0x64e   :  { %v855_v10 = vpop.permute.xlu0 %854 }
 0x64f   :  { %v857_v29 = vadd.f32 %v855_v10, %v847_v28  ;;  %v1213_v28 = vld [vmem:[#allocation2 + $0x1a0] sm:$0xff] }
 0x651   :  { %1646 = vtanh.f32 %v857_v29 }
 0x65e   :  { %v1647_v30 = vpop.eup %1646 }
 0x65f   :  { %860 = vrot.lane.b32.xlu1 %v1647_v30, %s1712_s0 }
 0x6d1   :  { %v861_v31 = vpop.permute.xlu1 %860 }
 0x6d2   :  { %v1922_v32 = vmul.f32 %v861_v31, %v845_v26  ;;  %v1212_v31 = vld [vmem:[#allocation2 + $0x198] sm:$0xff] }
 0x6d4   :  { %v865_v33 = vmul.f32 %v1922_v32, %v1891_v19  ;;  %v864_v34 = vmul.f32 %v1922_v32, %v1887_v16  ;;  %v1087_v7 = vrot.slane %v1922_v32, 6 }
 0x6d6   :  { %871 = vrot.lane.b32.xlu1 %v865_v33, %s1712_s0  ;;  %867 = vrot.lane.b32.xlu0 %v864_v34, %s1714_s28  ;;  %v1101_v34 = vrot.slane %v1889_v18, 4 }
 0x748   :  { %v872_v35 = vpop.permute.xlu1 %871  ;;  %v868_v36 = vpop.permute.xlu0 %867 }
 0x749   :  { %v874_v37 = vsel %vm760_vm10, %v868_v36, %v872_v35  ;;  %v1211_v36 = vld [vmem:[#allocation2 + $0x190] sm:$0xff] }
 0x74a   :  { %1532 = vmatmul.mubr.msk.f32.vlgmr.msra.gmra.mxu0 %vm643_vm11, %v874_v37 }
 0x74b   :  { %1569 = vmatprep.mubr.msk.f32.mxu0 %vm1711_vm0, %v1710_v8 }
 0x80a   :  { %v947_v38 = vpop.f32.mrf.mxu0 }
 0x80b   :  { %v951_v39 = vadd.f32 %v947_v38, %v1875_v52  ;;  %v1210_v38 = vld [vmem:[#allocation2 + $0x188] sm:$0xff] }
 0x80c   :  { %v1533_v40 = vpop.f32.mrf.mxu0 }
 0x80d   :  { %1648 = vtanh.f32 %v951_v39  ;;  %v952_v43 = vmul.f32 0.5, %v951_v39  ;;  %v1208_v39 = vld [vmem:[#allocation2 + $0x178] sm:$0xff]  ;;  %v1207_v40 = vld [vmem:[#allocation2 + $0x170] sm:$0xff] }
 0x80f   :  { %1650 = vtanh.f32 %v952_v43  ;;  %v1205_v43 = vld [vmem:[#allocation2 + $0x160] sm:$0xff] }
 0x81a   :  { %v1649_v41 = vpop.eup %1648 }
 0x81b   :  { %959 = vrot.lane.b32.xlu0 %v1649_v41, %s1712_s0  ;;  %v1206_v41 = vld [vmem:[#allocation2 + $0x168] sm:$0xff] }
 0x81c   :  { %v1651_v44 = vpop.eup %1650 }
 0x81d   :  { %v954_v45 = vadd.f32 1.0, %v1651_v44 }
 0x81f   :  { %v955_v46 = vmul.f32 0.5, %v954_v45 }
 0x821   :  { %v957_v49 = vmul.f32 %v955_v46, %v857_v29  ;;  %v1095_v29 = vsel %vm636_vm9, %v1889_v18, %v1087_v7  ;;  %v1209_v18 = vld [vmem:[#allocation2 + $0x180] sm:$0xff] }
 0x88d   :  { %v960_v47 = vpop.permute.xlu0 %959 }
 0x88e   :  { %v962_v48 = vmul.f32 %v960_v47, %v955_v46  ;;  %v1204_v47 = vld [vmem:[#allocation2 + $0x158] sm:$0xff] }
 0x890   :  { %964 = vrot.lane.b32.xlu1 %v962_v48, %s1714_s28  ;;  %v1203_v48 = vld [vmem:[#allocation2 + $0x150] sm:$0xff] }
 0x902   :  { %v965_v50 = vpop.permute.xlu1 %964 }
 0x903   :  { %v967_v51 = vadd.f32 %v965_v50, %v957_v49  ;;  %v1202_v49 = vld [vmem:[#allocation2 + $0x148] sm:$0xff]  ;;  %v1304_v50 = vld [vmem:[#allocation2 + $0x140] ss:$0 sm:$0xff] }
 0x905   :  { %1652 = vtanh.f32 %v967_v51 }
 0x912   :  { %v1653_v53 = vpop.eup %1652 }
 0x913   :  { %970 = vrot.lane.b32.xlu0 %v1653_v53, %s1712_s0 }
 0x985   :  { %v971_v52 = vpop.permute.xlu0 %970 }
 0x986   :  { %v1938_v42 = vmul.f32 %v971_v52, %v955_v46 }
 0x988   :  { %v975_v54 = vmul.f32 %v1938_v42, %v1891_v19  ;;  %v974_v56 = vmul.f32 %v1938_v42, %v1887_v16  ;;  %v1122_v19 = vld [vmem:[#allocation2 + $0x138] sm:$0xff]  ;;  %v1090_v26 = vrot.slane %v1938_v42, 4 }
 0x989   :  { %1554 = vmatpush3.msra.mxu0 %v1122_v19 }
 0x98a   :  { %981 = vrot.lane.b32.xlu0 %v975_v54, %s1712_s0  ;;  %977 = vrot.lane.b32.xlu1 %v974_v56, %s1714_s28  ;;  %v1097_v30 = vsel %vm1096_vm12, %v1095_v29, %v1090_v26  ;;  %v1306_v54 = vld [vmem:[#allocation2 + $0x1c8] ss:$0 sm:$0xff] }
 0x98b   :  { %1555 = vmatprep.subr.mxu0 %v1710_v8 }
 0x9fc   :  { %v982_v57 = vpop.permute.xlu0 %981  ;;  %v978_v58 = vpop.permute.xlu1 %977 }
 0x9fd   :  { %v984_v59 = vsel %vm760_vm10, %v978_v58, %v982_v57 }
 0x9fe   :  { %1551 = vmatmul.mubr.msk.f32.vlgmr.msra.gmra.mxu1 %vm643_vm11, %v984_v59 }
 0x9ff   :  { %1604 = vmatprep.mubr.msk.f32.mxu1 %vm1711_vm0, %v1710_v8  ;;  %1573 = vmatpush3.msra.mxu1 %v1217_v4 }
 0xa00   :  { %1574 = vmatprep.subr.mxu1 %v1710_v8 }
 0xa01   :  { %1575 = vmatpush3.msra.mxu1 %v1216_v5 }
 0xa02   :  { %1576 = vmatprep.subr.mxu1 %v1710_v8 }
 0xa03   :  { %1577 = vmatpush3.msra.mxu1 %v1215_v6 }
 0xa04   :  { %1578 = vmatprep.subr.mxu1 %v1710_v8 }
 0xa05   :  { %1579 = vmatpush3.msra.mxu1 %v1214_v27 }
 0xa06   :  { %1580 = vmatprep.subr.mxu1 %v1710_v8 }
 0xa07   :  { %1581 = vmatpush3.msra.mxu1 %v1213_v28 }
 0xa08   :  { %1582 = vmatprep.subr.mxu1 %v1710_v8 }
 0xa09   :  { %1583 = vmatpush3.msra.mxu1 %v1212_v31 }
 0xa0a   :  { %1584 = vmatprep.subr.mxu1 %v1710_v8 }
 0xa0b   :  { %1585 = vmatpush3.msra.mxu1 %v1211_v36 }
 0xa0c   :  { %1586 = vmatprep.subr.mxu1 %v1710_v8 }
 0xa0d   :  { %1587 = vmatpush3.msra.mxu1 %v1210_v38 }
 0xa0e   :  { %1588 = vmatprep.subr.mxu1 %v1710_v8 }
 0xa0f   :  { %1589 = vmatpush3.msra.mxu1 %v1209_v18 }
 0xa10   :  { %1590 = vmatprep.subr.mxu1 %v1710_v8 }
 0xa11   :  { %1591 = vmatpush3.msra.mxu1 %v1208_v39 }
 0xa12   :  { %1592 = vmatprep.subr.mxu1 %v1710_v8 }
 0xa13   :  { %1593 = vmatpush3.msra.mxu1 %v1207_v40 }
 0xa14   :  { %1594 = vmatprep.subr.mxu1 %v1710_v8 }
 0xa15   :  { %1595 = vmatpush3.msra.mxu1 %v1206_v41 }
 0xa16   :  { %1596 = vmatprep.subr.mxu1 %v1710_v8 }
 0xa17   :  { %1597 = vmatpush3.msra.mxu1 %v1205_v43 }
 0xa18   :  { %1598 = vmatprep.subr.mxu1 %v1710_v8 }
 0xa19   :  { %1599 = vmatpush3.msra.mxu1 %v1204_v47 }
 0xa1a   :  { %1600 = vmatprep.subr.mxu1 %v1710_v8 }
 0xa1b   :  { %1601 = vmatpush3.msra.mxu1 %v1203_v48 }
 0xa1c   :  { %1602 = vmatprep.subr.mxu1 %v1710_v8 }
 0xa1d   :  { %1603 = vmatpush3.msra.mxu1 %v1202_v49 }
 0xabe   :  { %v1059_v60 = vpop.f32.mrf.mxu1 }
 0xabf   :  { %v1063_v61 = vadd.f32 %v1059_v60, %v1880_v55  ;;  %v1121_v55 = vld [vmem:[#allocation2 + $0x130] sm:$0xff] }
 0xac0   :  { %v1552_v62 = vpop.f32.mrf.mxu1  ;;  %1556 = vmatpush3.msra.mxu0 %v1121_v55 }
 0xac1   :  { %1654 = vtanh.f32 %v1063_v61  ;;  %v1064_v0 = vmul.f32 0.5, %v1063_v61  ;;  %1557 = vmatprep.subr.mxu0 %v1710_v8 }
 0xac2   :  { %1558 = vmatpush3.msra.mxu0 %v1120_v20 }
 0xac3   :  { %1656 = vtanh.f32 %v1064_v0  ;;  %1559 = vmatprep.subr.mxu0 %v1710_v8 }
 0xac4   :  { %1560 = vmatpush3.msra.mxu0 %v1119_v21 }
 0xac5   :  { %1561 = vmatprep.subr.mxu0 %v1710_v8 }
 0xac6   :  { %1562 = vmatpush3.msra.mxu0 %v1118_v23 }
 0xac7   :  { %1563 = vmatprep.subr.mxu0 %v1710_v8 }
 0xac8   :  { %1564 = vmatpush3.msra.mxu0 %v1117_v24 }
 0xac9   :  { %1565 = vmatprep.subr.mxu0 %v1710_v8 }
 0xaca   :  { %1566 = vmatpush3.msra.mxu0 %v1116_v2 }
 0xacb   :  { %1567 = vmatprep.subr.mxu0 %v1710_v8 }
 0xacc   :  { %1568 = vmatpush3.msra.mxu0 %v1115_v3 }
 0xace   :  { %v1655_v63 = vpop.eup %1654 }
 0xacf   :  { %1071 = vrot.lane.b32.xlu1 %v1655_v63, %s1712_s0 }
 0xad0   :  { %v1657_v1 = vpop.eup %1656 }
 0xad1   :  { %v1066_v11 = vadd.f32 1.0, %v1657_v1 }
 0xad3   :  { %v1067_v12 = vmul.f32 0.5, %v1066_v11 }
 0xad5   :  { %v1069_v15 = vmul.f32 %v1067_v12, %v967_v51 }
 0xb41   :  { %v1072_v13 = vpop.permute.xlu1 %1071 }
 0xb42   :  { %v1074_v14 = vmul.f32 %v1072_v13, %v1067_v12 }
 0xb44   :  { %1076 = vrot.lane.b32.xlu0 %v1074_v14, %s1714_s28 }
 0xbb6   :  { %v1077_v16 = vpop.permute.xlu0 %1076 }
 0xbb7   :  { %v1079_v17 = vadd.f32 %v1077_v16, %v1069_v15 }
 0xbb9   :  { %1658 = vtanh.f32 %v1079_v17 }
 0xbc6   :  { %v1659_v22 = vpop.eup %1658 }
 0xbc7   :  { %1082 = vrot.lane.b32.xlu1 %v1659_v22, %s1712_s0 }
 0xc39   :  { %v1083_v25 = vpop.permute.xlu1 %1082 }
 0xc3a   :  { %v1085_v9 = vmul.f32 %v1083_v25, %v1067_v12 }
 0xc3c   :  { %v1093_v10 = vrot.slane %v1085_v9, 2 }
 0xc3e   :  { %v1103_v32 = vsel %vm636_vm9, %v1093_v10, %v1938_v42  ;;  %v1099_v33 = vsel %vm1098_vm13, %v1097_v30, %v1093_v10 }
 0xc3f   :  { %1107 = vrot.lane.b32.xlu0 %v1099_v33, %s1714_s28  ;;  %v1104_v35 = vsel %vm1096_vm12, %v1103_v32, %v1087_v7 }
 0xc40   :  { %v1105_v37 = vsel %vm1098_vm13, %v1104_v35, %v1101_v34 }
 0xc41   :  { %1111 = vrot.lane.b32.xlu1 %v1105_v37, %s1712_s0 }
 0xcb1   :  { %v1108_v44 = vpop.permute.xlu0 %1107 }
 0xcb3   :  { %v1112_v45 = vpop.permute.xlu1 %1111 }
 0xcb4   :  { %v1114_v46 = vsel %vm760_vm10, %v1108_v44, %v1112_v45 }
 0xcb5   :  { %1570 = vmatmul.mubr.msk.f32.vlgmr.msra.gmra.mxu0 %vm643_vm11, %v1114_v46 }
 0xd75   :  { %v1197_v51 = vpop.f32.mrf.mxu0 }
 0xd76   :  { %v1198_v53 = vadd.f32 %v1304_v50, %v1197_v51 }
 0xd77   :  { %v1571_v52 = vpop.f32.mrf.mxu0 }
 0xd78   :  { %v1201_v42 = vmax.f32 %v1198_v53, 0.0 }
 0xd7a   :  { %1605 = vmatmul.mubr.f32.vlgmr.msra.gmra.mxu1 %v1201_v42 }
 0xe3a   :  { %v1289_v56 = vpop.f32.mrf.mxu1 }
 0xe3b   :  { %v1290_v57 = vadd.f32 %v1306_v54, %v1289_v56 }
 0xe3c   :  { %v1606_v58 = vpop.f32.mrf.mxu1 }
 0xe3d   :  { %1293 = vst [vmem:[%s1997_s3] sm:$0xff] %v1290_v57 }
 0xe3e   :  { %1298 = vsyncpa [#allocation3], 1 }
 0xe3f   :  { %1299 = vsyncpa [#allocation5], 1 }

</bundles_post_ra>
